<compile_context>
chip_gen: v7x
topology: tpu7x:2x2x1
jax: 0.10.0
libtpu: 0.0.40
codegen_flags: <defaults>
</compile_context>

<pallas_src>
import functools

import jax
import jax.numpy as jnp
from jax.experimental import pallas as pl
from jax.experimental.pallas import tpu as pltpu

EPS = 1e-5


def mlp_kernel(x_ref,
               w1_ref, b1_ref, w2_ref, b2_ref, w3_ref, b3_ref, w4_ref, b4_ref,
               g1_ref, be1_ref, g2_ref, be2_ref, g3_ref, be3_ref,
               out_ref,
               s1_sum, s1_sq, s2_sum, s2_sq, s3_sum, s3_sq,
               bn1_scale, bn1_shift, bn2_scale, bn2_shift, w4_fold, b4_fold,
               *, inv_batch, matmul_dtype):
    phase = pl.program_id(0)   # 0: BN1 stats, 1: BN2 stats, 2: BN3 stats, 3: write output
    tile = pl.program_id(1)

    def bn_scale_shift(sum_ref, sq_ref, gamma_ref, beta_ref):
        mu = sum_ref[...] * inv_batch
        var = jnp.maximum(sq_ref[...] * inv_batch - mu * mu, 0.0)   # biased variance
        scale = gamma_ref[...] * jax.lax.rsqrt(var + EPS)           # EUP rsqrt (free slot)
        shift = beta_ref[...] - mu * scale
        return scale, shift

    # ---- per-phase one-time (1, N) row work, executed on the first tile only ----
    @pl.when((phase == 0) & (tile == 0))
    def _():
        s1_sum[...] = jnp.zeros_like(s1_sum)
        s1_sq[...] = jnp.zeros_like(s1_sq)

    @pl.when((phase == 1) & (tile == 0))
    def _():
        sc, sh = bn_scale_shift(s1_sum, s1_sq, g1_ref, be1_ref)
        bn1_scale[...] = sc
        bn1_shift[...] = sh
        s2_sum[...] = jnp.zeros_like(s2_sum)
        s2_sq[...] = jnp.zeros_like(s2_sq)

    @pl.when((phase == 2) & (tile == 0))
    def _():
        sc, sh = bn_scale_shift(s2_sum, s2_sq, g2_ref, be2_ref)
        bn2_scale[...] = sc
        bn2_shift[...] = sh
        s3_sum[...] = jnp.zeros_like(s3_sum)
        s3_sq[...] = jnp.zeros_like(s3_sq)

    @pl.when((phase == 3) & (tile == 0))
    def _():
        sc, sh = bn_scale_shift(s3_sum, s3_sq, g3_ref, be3_ref)
        # Fold BN3 straight into the width-1 output layer (row * row, layout-trivial).
        w4_fold[...] = w4_ref[...] * sc
        b4_fold[...] = b4_ref[...] + jnp.sum(sh * w4_ref[...], axis=-1, keepdims=True)

    # ---- per-tile compute (MXU in matmul_dtype, everything else f32) ----
    def matmul(h, w_ref, b_ref):
        return jnp.dot(h.astype(matmul_dtype), w_ref[...].astype(matmul_dtype),
                       preferred_element_type=jnp.float32) + b_ref[...]

    def layer1():
        return jnp.maximum(matmul(x_ref[...], w1_ref, b1_ref), 0.0)

    def layer2(a1):
        h1 = a1 * bn1_scale[...] + bn1_shift[...]          # BN1 as 2 VPU ops/elem
        return jnp.maximum(matmul(h1, w2_ref, b2_ref), 0.0)

    def layer3(a2):
        h2 = a2 * bn2_scale[...] + bn2_shift[...]          # BN2 as 2 VPU ops/elem
        return jnp.maximum(matmul(h2, w3_ref, b3_ref), 0.0)

    def accumulate(a, sum_ref, sq_ref):
        sum_ref[...] += jnp.sum(a, axis=0, keepdims=True)
        sq_ref[...] += jnp.sum(a * a, axis=0, keepdims=True)

    @pl.when(phase == 0)
    def _():
        accumulate(layer1(), s1_sum, s1_sq)

    @pl.when(phase == 1)
    def _():
        accumulate(layer2(layer1()), s2_sum, s2_sq)

    @pl.when(phase == 2)
    def _():
        accumulate(layer3(layer2(layer1())), s3_sum, s3_sq)

    @pl.when(phase == 3)
    def _():
        a3 = layer3(layer2(layer1()))
        # Output layer (32 -> 1): VPU multiply + lane reduction; BN3 already folded in.
        out_ref[...] = (jnp.sum(a3 * w4_fold[...], axis=-1, keepdims=True)
                        + b4_fold[...])


def _pick_block_rows(batch):
    # Largest multiple of 8 (f32 sublane) that divides the batch; capped so the x tile
    # stays comfortably inside v7x's smaller VMEM.
    for tb in (1024, 512, 256, 128, 64, 32, 16, 8):
        if batch % tb == 0:
            return tb
    return batch


def binary_classification_forward(x, params, *, block_rows=None,
                                  matmul_dtype=jnp.float32):
    """x: (B, features) float32. params: dict from init_params (weights stored as (in, out))."""
    batch, features = x.shape
    if block_rows is None:
        block_rows = _pick_block_rows(batch)
    if batch % block_rows != 0 or (block_rows % 8 != 0 and block_rows != batch):
        raise ValueError(f"block_rows={block_rows} must divide batch={batch} and be a "
                         f"multiple of 8 (or equal to the batch).")
    num_tiles = batch // block_rows

    w4_row = params["w4"].reshape(1, 32)   # (32, 1) -> (1, 32) row for the VPU reduce
    inputs = (
        x,
        params["w1"], params["b1"], params["w2"], params["b2"],
        params["w3"], params["b3"], w4_row, params["b4"],
        params["g1"], params["be1"], params["g2"], params["be2"],
        params["g3"], params["be3"],
    )

    def resident(a):   # whole array, fetched once, stays in VMEM across all grid steps
        return pl.BlockSpec(a.shape, lambda p, i: (0, 0))

    in_specs = [pl.BlockSpec((block_rows, features), lambda p, i: (i, 0))]
    in_specs += [resident(a) for a in inputs[1:]]
    out_specs = pl.BlockSpec((block_rows, 1), lambda p, i: (i, 0))

    f32 = jnp.float32
    scratch_shapes = [
        pltpu.VMEM((1, 128), f32), pltpu.VMEM((1, 128), f32),   # layer-1 sum / sumsq
        pltpu.VMEM((1, 64), f32), pltpu.VMEM((1, 64), f32),     # layer-2 sum / sumsq
        pltpu.VMEM((1, 32), f32), pltpu.VMEM((1, 32), f32),     # layer-3 sum / sumsq
        pltpu.VMEM((1, 128), f32), pltpu.VMEM((1, 128), f32),   # BN1 scale / shift
        pltpu.VMEM((1, 64), f32), pltpu.VMEM((1, 64), f32),     # BN2 scale / shift
        pltpu.VMEM((1, 32), f32), pltpu.VMEM((1, 1), f32),      # folded W4 row / b4
    ]

    grid_spec = pltpu.PrefetchScalarGridSpec(
        num_scalar_prefetch=0,
        grid=(4, num_tiles),     # (BN phase, batch tile); tile axis iterates fastest
        in_specs=in_specs,
        out_specs=out_specs,
        scratch_shapes=scratch_shapes,
    )

    flops = 2 * batch * (4 * features * 128 + 3 * 128 * 64 + 2 * 64 * 32 + 32)
    param_bytes = sum(int(a.size) * a.dtype.itemsize for a in inputs[1:])
    cost = pl.CostEstimate(
        flops=int(flops),
        transcendentals=224,   # three (1, N) rsqrt rows
        bytes_accessed=int(4 * batch * features * 4 + batch * 4 + param_bytes),
    )

    kernel = functools.partial(
        mlp_kernel, inv_batch=1.0 / batch, matmul_dtype=matmul_dtype)

    return pl.pallas_call(
        kernel,
        out_shape=jax.ShapeDtypeStruct((batch, 1), jnp.float32),
        grid_spec=grid_spec,
        compiler_params=pltpu.CompilerParams(
            # Phase axis is a sequential reduction; the tile axis accumulates full-batch
            # BN statistics into shared VMEM scratch, so it must also stay on one core.
            dimension_semantics=("arbitrary", "arbitrary"),
            vmem_limit_bytes=32 * 1024 * 1024,
        ),
        cost_estimate=cost,
    )(*inputs)


def init_params(key, features):
    """PyTorch-style nn.Linear init (U[-1/sqrt(in), 1/sqrt(in)]); weights stored as (in, out);
    BatchNorm gamma = 1, beta = 0 (fresh module)."""
    dims = [(features, 128), (128, 64), (64, 32), (32, 1)]
    params = {}
    keys = jax.random.split(key, 2 * len(dims))
    for i, (fin, fout) in enumerate(dims):
        bound = 1.0 / jnp.sqrt(jnp.float32(fin))
        params[f"w{i + 1}"] = jax.random.uniform(keys[2 * i], (fin, fout), jnp.float32,
                                                 -bound, bound)
        params[f"b{i + 1}"] = jax.random.uniform(keys[2 * i + 1], (1, fout), jnp.float32,
                                                 -bound, bound)
    for i, n in enumerate([128, 64, 32]):
        params[f"g{i + 1}"] = jnp.ones((1, n), jnp.float32)
        params[f"be{i + 1}"] = jnp.zeros((1, n), jnp.float32)
    return params


def _bn_train(h, gamma, beta):
    mu = jnp.mean(h, axis=0, keepdims=True)
    var = jnp.mean((h - mu) ** 2, axis=0, keepdims=True)
    return (h - mu) * jax.lax.rsqrt(var + EPS) * gamma + beta


def reference_forward(x, p):
    """Pure-JAX f32 reference of the same forward pass."""
    h = jnp.maximum(x @ p["w1"] + p["b1"], 0.0)
    h = _bn_train(h, p["g1"], p["be1"])
    h = jnp.maximum(h @ p["w2"] + p["b2"], 0.0)
    h = _bn_train(h, p["g2"], p["be2"])
    h = jnp.maximum(h @ p["w3"] + p["b3"], 0.0)
    h = _bn_train(h, p["g3"], p["be3"])
    return h @ p["w4"] + p["b4"]


if __name__ == "__main__":
    key = jax.random.PRNGKey(0)
    k_x_small, k_x_big, k_p = jax.random.split(key, 3)

    features = 32
    params = init_params(k_p, features)

    # Small, single-tile case.
    x_small = jax.random.normal(k_x_small, (8, features), jnp.float32)
    out_small = jax.block_until_ready(binary_classification_forward(x_small, params))
    ref_small = reference_forward(x_small, params)
    assert out_small.shape == (8, 1)
    assert jnp.allclose(out_small, ref_small, atol=1e-3, rtol=1e-3), "f32 small-batch mismatch"

    # Multi-tile case: exercises the streamed-batch pipeline + full-batch BN statistics.
    x_big = jax.random.normal(k_x_big, (512, features), jnp.float32)
    out_big = jax.block_until_ready(
        binary_classification_forward(x_big, params, block_rows=128))
    ref_big = reference_forward(x_big, params)
    assert jnp.allclose(out_big, ref_big, atol=1e-3, rtol=1e-3), "f32 multi-tile mismatch"

    # bf16-MXU fast path (BN/ReLU stay f32): sanity check against the f32 reference.
    out_bf16 = jax.block_until_ready(
        binary_classification_forward(x_big, params, block_rows=128,
                                      matmul_dtype=jnp.bfloat16))
    assert jnp.allclose(out_bf16, ref_big, atol=3e-1, rtol=5e-2), "bf16 fast-path mismatch"

    print("KERNEL_OK")
</pallas_src>

<mosaic_0001>
module attributes {stable_mosaic.version = 11 : i64} {
  func.func @mlp_kernel(%arg0: i32, %arg1: i32, %arg2: memref<8x32xf32, #tpu.memory_space<vmem>>, %arg3: memref<32x128xf32, #tpu.memory_space<vmem>>, %arg4: memref<1x128xf32, #tpu.memory_space<vmem>>, %arg5: memref<128x64xf32, #tpu.memory_space<vmem>>, %arg6: memref<1x64xf32, #tpu.memory_space<vmem>>, %arg7: memref<64x32xf32, #tpu.memory_space<vmem>>, %arg8: memref<1x32xf32, #tpu.memory_space<vmem>>, %arg9: memref<1x32xf32, #tpu.memory_space<vmem>>, %arg10: memref<1x1xf32, #tpu.memory_space<vmem>>, %arg11: memref<1x128xf32, #tpu.memory_space<vmem>>, %arg12: memref<1x128xf32, #tpu.memory_space<vmem>>, %arg13: memref<1x64xf32, #tpu.memory_space<vmem>>, %arg14: memref<1x64xf32, #tpu.memory_space<vmem>>, %arg15: memref<1x32xf32, #tpu.memory_space<vmem>>, %arg16: memref<1x32xf32, #tpu.memory_space<vmem>>, %arg17: memref<8x1xf32, #tpu.memory_space<vmem>>, %arg18: memref<1x128xf32, #tpu.memory_space<vmem>>, %arg19: memref<1x128xf32, #tpu.memory_space<vmem>>, %arg20: memref<1x64xf32, #tpu.memory_space<vmem>>, %arg21: memref<1x64xf32, #tpu.memory_space<vmem>>, %arg22: memref<1x32xf32, #tpu.memory_space<vmem>>, %arg23: memref<1x32xf32, #tpu.memory_space<vmem>>, %arg24: memref<1x128xf32, #tpu.memory_space<vmem>>, %arg25: memref<1x128xf32, #tpu.memory_space<vmem>>, %arg26: memref<1x64xf32, #tpu.memory_space<vmem>>, %arg27: memref<1x64xf32, #tpu.memory_space<vmem>>, %arg28: memref<1x32xf32, #tpu.memory_space<vmem>>, %arg29: memref<1x1xf32, #tpu.memory_space<vmem>>) attributes {dimension_semantics = [#tpu.dimension_semantics<arbitrary>, #tpu.dimension_semantics<arbitrary>], iteration_bounds = array<i64: 4, 1>, scalar_prefetch = 0 : i64, scratch_operands = 12 : i64, tpu.core_type = #tpu.core_type<tc>, window_params = [{transform_indices = @transform_0, window_bounds = array<i64: 8, 32>}, {pipeline_mode = #tpu.pipeline_mode<synchronous>, transform_indices = @transform_1, window_bounds = array<i64: 32, 128>}, {pipeline_mode = #tpu.pipeline_mode<synchronous>, transform_indices = @transform_2, window_bounds = array<i64: 1, 128>}, {pipeline_mode = #tpu.pipeline_mode<synchronous>, transform_indices = @transform_3, window_bounds = array<i64: 128, 64>}, {pipeline_mode = #tpu.pipeline_mode<synchronous>, transform_indices = @transform_4, window_bounds = array<i64: 1, 64>}, {pipeline_mode = #tpu.pipeline_mode<synchronous>, transform_indices = @transform_5, window_bounds = array<i64: 64, 32>}, {pipeline_mode = #tpu.pipeline_mode<synchronous>, transform_indices = @transform_6, window_bounds = array<i64: 1, 32>}, {pipeline_mode = #tpu.pipeline_mode<synchronous>, transform_indices = @transform_7, window_bounds = array<i64: 1, 32>}, {pipeline_mode = #tpu.pipeline_mode<synchronous>, transform_indices = @transform_8, window_bounds = array<i64: 1, 1>}, {pipeline_mode = #tpu.pipeline_mode<synchronous>, transform_indices = @transform_9, window_bounds = array<i64: 1, 128>}, {pipeline_mode = #tpu.pipeline_mode<synchronous>, transform_indices = @transform_10, window_bounds = array<i64: 1, 128>}, {pipeline_mode = #tpu.pipeline_mode<synchronous>, transform_indices = @transform_11, window_bounds = array<i64: 1, 64>}, {pipeline_mode = #tpu.pipeline_mode<synchronous>, transform_indices = @transform_12, window_bounds = array<i64: 1, 64>}, {pipeline_mode = #tpu.pipeline_mode<synchronous>, transform_indices = @transform_13, window_bounds = array<i64: 1, 32>}, {pipeline_mode = #tpu.pipeline_mode<synchronous>, transform_indices = @transform_14, window_bounds = array<i64: 1, 32>}, {transform_indices = @transform_15, window_bounds = array<i64: 8, 1>}]} {
    %c0_i32 = arith.constant 0 : i32
    %0 = arith.cmpi eq, %arg0, %c0_i32 : i32
    %c0_i32_0 = arith.constant 0 : i32
    %1 = arith.cmpi eq, %arg1, %c0_i32_0 : i32
    %2 = arith.andi %0, %1 : i1
    %3 = arith.extui %2 : i1 to i32
    %c0_i32_1 = arith.constant 0 : i32
    %4 = arith.cmpi ne, %3, %c0_i32_1 : i32
    scf.if %4 {
      %cst = arith.constant 0.000000e+00 : f32
      %32 = vector.broadcast %cst : f32 to vector<1x128xf32>
      %c0 = arith.constant 0 : index
      %c0_16 = arith.constant 0 : index
      %33 = vector.load %arg18[%c0, %c0_16] : memref<1x128xf32, #tpu.memory_space<vmem>>, vector<1x128xf32>
      tpu.vector_store %arg18[%c0, %c0_16], %32 {strides = array<i32>} : memref<1x128xf32, #tpu.memory_space<vmem>>, vector<1x128xf32>,
      %cst_17 = arith.constant 0.000000e+00 : f32
      %34 = vector.broadcast %cst_17 : f32 to vector<1x128xf32>
      %c0_18 = arith.constant 0 : index
      %c0_19 = arith.constant 0 : index
      %35 = vector.load %arg19[%c0_18, %c0_19] : memref<1x128xf32, #tpu.memory_space<vmem>>, vector<1x128xf32>
      tpu.vector_store %arg19[%c0_18, %c0_19], %34 {strides = array<i32>} : memref<1x128xf32, #tpu.memory_space<vmem>>, vector<1x128xf32>,
    } else {
    }
    %c1_i32 = arith.constant 1 : i32
    %5 = arith.cmpi eq, %arg0, %c1_i32 : i32
    %c0_i32_2 = arith.constant 0 : i32
    %6 = arith.cmpi eq, %arg1, %c0_i32_2 : i32
    %7 = arith.andi %5, %6 : i1
    %8 = arith.extui %7 : i1 to i32
    %c0_i32_3 = arith.constant 0 : i32
    %9 = arith.cmpi ne, %8, %c0_i32_3 : i32
    scf.if %9 {
      %c0 = arith.constant 0 : index
      %c0_16 = arith.constant 0 : index
      %32 = vector.load %arg18[%c0, %c0_16] : memref<1x128xf32, #tpu.memory_space<vmem>>, vector<1x128xf32>
      %cst = arith.constant 1.250000e-01 : f32
      %33 = vector.broadcast %cst : f32 to vector<1x128xf32>
      %34 = arith.mulf %32, %33 : vector<1x128xf32>
      %c0_17 = arith.constant 0 : index
      %c0_18 = arith.constant 0 : index
      %35 = vector.load %arg19[%c0_17, %c0_18] : memref<1x128xf32, #tpu.memory_space<vmem>>, vector<1x128xf32>
      %cst_19 = arith.constant 1.250000e-01 : f32
      %36 = vector.broadcast %cst_19 : f32 to vector<1x128xf32>
      %37 = arith.mulf %35, %36 : vector<1x128xf32>
      %38 = arith.mulf %34, %34 : vector<1x128xf32>
      %39 = arith.subf %37, %38 : vector<1x128xf32>
      %cst_20 = arith.constant 0.000000e+00 : f32
      %40 = vector.broadcast %cst_20 : f32 to vector<1x128xf32>
      %41 = arith.maximumf %39, %40 : vector<1x128xf32>
      %c0_21 = arith.constant 0 : index
      %c0_22 = arith.constant 0 : index
      %42 = vector.load %arg11[%c0_21, %c0_22] : memref<1x128xf32, #tpu.memory_space<vmem>>, vector<1x128xf32>
      %cst_23 = arith.constant 9.99999974E-6 : f32
      %43 = vector.broadcast %cst_23 : f32 to vector<1x128xf32>
      %44 = arith.addf %41, %43 : vector<1x128xf32>
      %45 = math.rsqrt %44 : vector<1x128xf32>
      %46 = arith.mulf %42, %45 : vector<1x128xf32>
      %c0_24 = arith.constant 0 : index
      %c0_25 = arith.constant 0 : index
      %47 = vector.load %arg12[%c0_24, %c0_25] : memref<1x128xf32, #tpu.memory_space<vmem>>, vector<1x128xf32>
      %48 = arith.mulf %34, %46 : vector<1x128xf32>
      %49 = arith.subf %47, %48 : vector<1x128xf32>
      %c0_26 = arith.constant 0 : index
      %c0_27 = arith.constant 0 : index
      %50 = vector.load %arg24[%c0_26, %c0_27] : memref<1x128xf32, #tpu.memory_space<vmem>>, vector<1x128xf32>
      tpu.vector_store %arg24[%c0_26, %c0_27], %46 {strides = array<i32>} : memref<1x128xf32, #tpu.memory_space<vmem>>, vector<1x128xf32>,
      %c0_28 = arith.constant 0 : index
      %c0_29 = arith.constant 0 : index
      %51 = vector.load %arg25[%c0_28, %c0_29] : memref<1x128xf32, #tpu.memory_space<vmem>>, vector<1x128xf32>
      tpu.vector_store %arg25[%c0_28, %c0_29], %49 {strides = array<i32>} : memref<1x128xf32, #tpu.memory_space<vmem>>, vector<1x128xf32>,
      %cst_30 = arith.constant 0.000000e+00 : f32
      %52 = vector.broadcast %cst_30 : f32 to vector<1x64xf32>
      %c0_31 = arith.constant 0 : index
      %c0_32 = arith.constant 0 : index
      %53 = vector.load %arg20[%c0_31, %c0_32] : memref<1x64xf32, #tpu.memory_space<vmem>>, vector<1x64xf32>
      tpu.vector_store %arg20[%c0_31, %c0_32], %52 {strides = array<i32>} : memref<1x64xf32, #tpu.memory_space<vmem>>, vector<1x64xf32>,
      %cst_33 = arith.constant 0.000000e+00 : f32
      %54 = vector.broadcast %cst_33 : f32 to vector<1x64xf32>
      %c0_34 = arith.constant 0 : index
      %c0_35 = arith.constant 0 : index
      %55 = vector.load %arg21[%c0_34, %c0_35] : memref<1x64xf32, #tpu.memory_space<vmem>>, vector<1x64xf32>
      tpu.vector_store %arg21[%c0_34, %c0_35], %54 {strides = array<i32>} : memref<1x64xf32, #tpu.memory_space<vmem>>, vector<1x64xf32>,
    } else {
    }
    %c2_i32 = arith.constant 2 : i32
    %10 = arith.cmpi eq, %arg0, %c2_i32 : i32
    %c0_i32_4 = arith.constant 0 : i32
    %11 = arith.cmpi eq, %arg1, %c0_i32_4 : i32
    %12 = arith.andi %10, %11 : i1
    %13 = arith.extui %12 : i1 to i32
    %c0_i32_5 = arith.constant 0 : i32
    %14 = arith.cmpi ne, %13, %c0_i32_5 : i32
    scf.if %14 {
      %c0 = arith.constant 0 : index
      %c0_16 = arith.constant 0 : index
      %32 = vector.load %arg20[%c0, %c0_16] : memref<1x64xf32, #tpu.memory_space<vmem>>, vector<1x64xf32>
      %cst = arith.constant 1.250000e-01 : f32
      %33 = vector.broadcast %cst : f32 to vector<1x64xf32>
      %34 = arith.mulf %32, %33 : vector<1x64xf32>
      %c0_17 = arith.constant 0 : index
      %c0_18 = arith.constant 0 : index
      %35 = vector.load %arg21[%c0_17, %c0_18] : memref<1x64xf32, #tpu.memory_space<vmem>>, vector<1x64xf32>
      %cst_19 = arith.constant 1.250000e-01 : f32
      %36 = vector.broadcast %cst_19 : f32 to vector<1x64xf32>
      %37 = arith.mulf %35, %36 : vector<1x64xf32>
      %38 = arith.mulf %34, %34 : vector<1x64xf32>
      %39 = arith.subf %37, %38 : vector<1x64xf32>
      %cst_20 = arith.constant 0.000000e+00 : f32
      %40 = vector.broadcast %cst_20 : f32 to vector<1x64xf32>
      %41 = arith.maximumf %39, %40 : vector<1x64xf32>
      %c0_21 = arith.constant 0 : index
      %c0_22 = arith.constant 0 : index
      %42 = vector.load %arg13[%c0_21, %c0_22] : memref<1x64xf32, #tpu.memory_space<vmem>>, vector<1x64xf32>
      %cst_23 = arith.constant 9.99999974E-6 : f32
      %43 = vector.broadcast %cst_23 : f32 to vector<1x64xf32>
      %44 = arith.addf %41, %43 : vector<1x64xf32>
      %45 = math.rsqrt %44 : vector<1x64xf32>
      %46 = arith.mulf %42, %45 : vector<1x64xf32>
      %c0_24 = arith.constant 0 : index
      %c0_25 = arith.constant 0 : index
      %47 = vector.load %arg14[%c0_24, %c0_25] : memref<1x64xf32, #tpu.memory_space<vmem>>, vector<1x64xf32>
      %48 = arith.mulf %34, %46 : vector<1x64xf32>
      %49 = arith.subf %47, %48 : vector<1x64xf32>
      %c0_26 = arith.constant 0 : index
      %c0_27 = arith.constant 0 : index
      %50 = vector.load %arg26[%c0_26, %c0_27] : memref<1x64xf32, #tpu.memory_space<vmem>>, vector<1x64xf32>
      tpu.vector_store %arg26[%c0_26, %c0_27], %46 {strides = array<i32>} : memref<1x64xf32, #tpu.memory_space<vmem>>, vector<1x64xf32>,
      %c0_28 = arith.constant 0 : index
      %c0_29 = arith.constant 0 : index
      %51 = vector.load %arg27[%c0_28, %c0_29] : memref<1x64xf32, #tpu.memory_space<vmem>>, vector<1x64xf32>
      tpu.vector_store %arg27[%c0_28, %c0_29], %49 {strides = array<i32>} : memref<1x64xf32, #tpu.memory_space<vmem>>, vector<1x64xf32>,
      %cst_30 = arith.constant 0.000000e+00 : f32
      %52 = vector.broadcast %cst_30 : f32 to vector<1x32xf32>
      %c0_31 = arith.constant 0 : index
      %c0_32 = arith.constant 0 : index
      %53 = vector.load %arg22[%c0_31, %c0_32] : memref<1x32xf32, #tpu.memory_space<vmem>>, vector<1x32xf32>
      tpu.vector_store %arg22[%c0_31, %c0_32], %52 {strides = array<i32>} : memref<1x32xf32, #tpu.memory_space<vmem>>, vector<1x32xf32>,
      %cst_33 = arith.constant 0.000000e+00 : f32
      %54 = vector.broadcast %cst_33 : f32 to vector<1x32xf32>
      %c0_34 = arith.constant 0 : index
      %c0_35 = arith.constant 0 : index
      %55 = vector.load %arg23[%c0_34, %c0_35] : memref<1x32xf32, #tpu.memory_space<vmem>>, vector<1x32xf32>
      tpu.vector_store %arg23[%c0_34, %c0_35], %54 {strides = array<i32>} : memref<1x32xf32, #tpu.memory_space<vmem>>, vector<1x32xf32>,
    } else {
    }
    %c3_i32 = arith.constant 3 : i32
    %15 = arith.cmpi eq, %arg0, %c3_i32 : i32
    %c0_i32_6 = arith.constant 0 : i32
    %16 = arith.cmpi eq, %arg1, %c0_i32_6 : i32
    %17 = arith.andi %15, %16 : i1
    %18 = arith.extui %17 : i1 to i32
    %c0_i32_7 = arith.constant 0 : i32
    %19 = arith.cmpi ne, %18, %c0_i32_7 : i32
    scf.if %19 {
      %c0 = arith.constant 0 : index
      %c0_16 = arith.constant 0 : index
      %32 = vector.load %arg22[%c0, %c0_16] : memref<1x32xf32, #tpu.memory_space<vmem>>, vector<1x32xf32>
      %cst = arith.constant 1.250000e-01 : f32
      %33 = vector.broadcast %cst : f32 to vector<1x32xf32>
      %34 = arith.mulf %32, %33 : vector<1x32xf32>
      %c0_17 = arith.constant 0 : index
      %c0_18 = arith.constant 0 : index
      %35 = vector.load %arg23[%c0_17, %c0_18] : memref<1x32xf32, #tpu.memory_space<vmem>>, vector<1x32xf32>
      %cst_19 = arith.constant 1.250000e-01 : f32
      %36 = vector.broadcast %cst_19 : f32 to vector<1x32xf32>
      %37 = arith.mulf %35, %36 : vector<1x32xf32>
      %38 = arith.mulf %34, %34 : vector<1x32xf32>
      %39 = arith.subf %37, %38 : vector<1x32xf32>
      %cst_20 = arith.constant 0.000000e+00 : f32
      %40 = vector.broadcast %cst_20 : f32 to vector<1x32xf32>
      %41 = arith.maximumf %39, %40 : vector<1x32xf32>
      %c0_21 = arith.constant 0 : index
      %c0_22 = arith.constant 0 : index
      %42 = vector.load %arg15[%c0_21, %c0_22] : memref<1x32xf32, #tpu.memory_space<vmem>>, vector<1x32xf32>
      %cst_23 = arith.constant 9.99999974E-6 : f32
      %43 = vector.broadcast %cst_23 : f32 to vector<1x32xf32>
      %44 = arith.addf %41, %43 : vector<1x32xf32>
      %45 = math.rsqrt %44 : vector<1x32xf32>
      %46 = arith.mulf %42, %45 : vector<1x32xf32>
      %c0_24 = arith.constant 0 : index
      %c0_25 = arith.constant 0 : index
      %47 = vector.load %arg16[%c0_24, %c0_25] : memref<1x32xf32, #tpu.memory_space<vmem>>, vector<1x32xf32>
      %48 = arith.mulf %34, %46 : vector<1x32xf32>
      %49 = arith.subf %47, %48 : vector<1x32xf32>
      %c0_26 = arith.constant 0 : index
      %c0_27 = arith.constant 0 : index
      %50 = vector.load %arg9[%c0_26, %c0_27] : memref<1x32xf32, #tpu.memory_space<vmem>>, vector<1x32xf32>
      %51 = arith.mulf %50, %46 : vector<1x32xf32>
      %c0_28 = arith.constant 0 : index
      %c0_29 = arith.constant 0 : index
      %52 = vector.load %arg28[%c0_28, %c0_29] : memref<1x32xf32, #tpu.memory_space<vmem>>, vector<1x32xf32>
      tpu.vector_store %arg28[%c0_28, %c0_29], %51 {strides = array<i32>} : memref<1x32xf32, #tpu.memory_space<vmem>>, vector<1x32xf32>,
      %c0_30 = arith.constant 0 : index
      %c0_31 = arith.constant 0 : index
      %53 = vector.load %arg10[%c0_30, %c0_31] : memref<1x1xf32, #tpu.memory_space<vmem>>, vector<1x1xf32>
      %c0_32 = arith.constant 0 : index
      %c0_33 = arith.constant 0 : index
      %54 = vector.load %arg9[%c0_32, %c0_33] : memref<1x32xf32, #tpu.memory_space<vmem>>, vector<1x32xf32>
      %55 = arith.mulf %49, %54 : vector<1x32xf32>
      %cst_34 = arith.constant dense<0.000000e+00> : vector<1xf32>
      %56 = vector.multi_reduction <add>, %55, %cst_34 [1] : vector<1x32xf32> to vector<1xf32>
      %57 = vector.shape_cast %56 : vector<1xf32> to vector<1x1xf32>
      %58 = arith.addf %53, %57 : vector<1x1xf32>
      %c0_35 = arith.constant 0 : index
      %c0_36 = arith.constant 0 : index
      %59 = vector.load %arg29[%c0_35, %c0_36] : memref<1x1xf32, #tpu.memory_space<vmem>>, vector<1x1xf32>
      tpu.vector_store %arg29[%c0_35, %c0_36], %58 {strides = array<i32>} : memref<1x1xf32, #tpu.memory_space<vmem>>, vector<1x1xf32>,
    } else {
    }
    %c0_i32_8 = arith.constant 0 : i32
    %20 = arith.cmpi eq, %arg0, %c0_i32_8 : i32
    %21 = arith.extui %20 : i1 to i32
    %c0_i32_9 = arith.constant 0 : i32
    %22 = arith.cmpi ne, %21, %c0_i32_9 : i32
    scf.if %22 {
      %c0 = arith.constant 0 : index
      %c0_16 = arith.constant 0 : index
      %32 = vector.load %arg2[%c0, %c0_16] : memref<8x32xf32, #tpu.memory_space<vmem>>, vector<8x32xf32>
      %c0_17 = arith.constant 0 : index
      %c0_18 = arith.constant 0 : index
      %33 = vector.load %arg3[%c0_17, %c0_18] : memref<32x128xf32, #tpu.memory_space<vmem>>, vector<32x128xf32>
      %cst = arith.constant dense<0.000000e+00> : vector<8x128xf32>
      %34 = tpu.matmul %32, %33, %cst {dimension_numbers = #tpu.dot_dimension_numbers<[1], [0], [0], [1], [0, 0, 1, 1], [], []>} : vector<8x32xf32>, vector<32x128xf32>, vector<8x128xf32> -> vector<8x128xf32>
      %c0_19 = arith.constant 0 : index
      %c0_20 = arith.constant 0 : index
      %35 = vector.load %arg4[%c0_19, %c0_20] : memref<1x128xf32, #tpu.memory_space<vmem>>, vector<1x128xf32>
      %36 = vector.broadcast %35 : vector<1x128xf32> to vector<8x128xf32>
      %37 = arith.addf %34, %36 : vector<8x128xf32>
      %cst_21 = arith.constant 0.000000e+00 : f32
      %38 = vector.broadcast %cst_21 : f32 to vector<8x128xf32>
      %39 = arith.maximumf %37, %38 : vector<8x128xf32>
      %c0_22 = arith.constant 0 : index
      %c0_23 = arith.constant 0 : index
      %40 = vector.load %arg18[%c0_22, %c0_23] : memref<1x128xf32, #tpu.memory_space<vmem>>, vector<1x128xf32>
      %cst_24 = arith.constant dense<0.000000e+00> : vector<128xf32>
      %41 = vector.multi_reduction <add>, %39, %cst_24 [0] : vector<8x128xf32> to vector<128xf32>
      %42 = vector.shape_cast %41 : vector<128xf32> to vector<1x128xf32>
      %43 = arith.addf %40, %42 : vector<1x128xf32>
      %c0_25 = arith.constant 0 : index
      %c0_26 = arith.constant 0 : index
      %44 = vector.load %arg18[%c0_25, %c0_26] : memref<1x128xf32, #tpu.memory_space<vmem>>, vector<1x128xf32>
      tpu.vector_store %arg18[%c0_25, %c0_26], %43 {strides = array<i32>} : memref<1x128xf32, #tpu.memory_space<vmem>>, vector<1x128xf32>,
      %c0_27 = arith.constant 0 : index
      %c0_28 = arith.constant 0 : index
      %45 = vector.load %arg19[%c0_27, %c0_28] : memref<1x128xf32, #tpu.memory_space<vmem>>, vector<1x128xf32>
      %46 = arith.mulf %39, %39 : vector<8x128xf32>
      %cst_29 = arith.constant dense<0.000000e+00> : vector<128xf32>
      %47 = vector.multi_reduction <add>, %46, %cst_29 [0] : vector<8x128xf32> to vector<128xf32>
      %48 = vector.shape_cast %47 : vector<128xf32> to vector<1x128xf32>
      %49 = arith.addf %45, %48 : vector<1x128xf32>
      %c0_30 = arith.constant 0 : index
      %c0_31 = arith.constant 0 : index
      %50 = vector.load %arg19[%c0_30, %c0_31] : memref<1x128xf32, #tpu.memory_space<vmem>>, vector<1x128xf32>
      tpu.vector_store %arg19[%c0_30, %c0_31], %49 {strides = array<i32>} : memref<1x128xf32, #tpu.memory_space<vmem>>, vector<1x128xf32>,
    } else {
    }
    %c1_i32_10 = arith.constant 1 : i32
    %23 = arith.cmpi eq, %arg0, %c1_i32_10 : i32
    %24 = arith.extui %23 : i1 to i32
    %c0_i32_11 = arith.constant 0 : i32
    %25 = arith.cmpi ne, %24, %c0_i32_11 : i32
    scf.if %25 {
      %c0 = arith.constant 0 : index
      %c0_16 = arith.constant 0 : index
      %32 = vector.load %arg2[%c0, %c0_16] : memref<8x32xf32, #tpu.memory_space<vmem>>, vector<8x32xf32>
      %c0_17 = arith.constant 0 : index
      %c0_18 = arith.constant 0 : index
      %33 = vector.load %arg3[%c0_17, %c0_18] : memref<32x128xf32, #tpu.memory_space<vmem>>, vector<32x128xf32>
      %cst = arith.constant dense<0.000000e+00> : vector<8x128xf32>
      %34 = tpu.matmul %32, %33, %cst {dimension_numbers = #tpu.dot_dimension_numbers<[1], [0], [0], [1], [0, 0, 1, 1], [], []>} : vector<8x32xf32>, vector<32x128xf32>, vector<8x128xf32> -> vector<8x128xf32>
      %c0_19 = arith.constant 0 : index
      %c0_20 = arith.constant 0 : index
      %35 = vector.load %arg4[%c0_19, %c0_20] : memref<1x128xf32, #tpu.memory_space<vmem>>, vector<1x128xf32>
      %36 = vector.broadcast %35 : vector<1x128xf32> to vector<8x128xf32>
      %37 = arith.addf %34, %36 : vector<8x128xf32>
      %cst_21 = arith.constant 0.000000e+00 : f32
      %38 = vector.broadcast %cst_21 : f32 to vector<8x128xf32>
      %39 = arith.maximumf %37, %38 : vector<8x128xf32>
      %c0_22 = arith.constant 0 : index
      %c0_23 = arith.constant 0 : index
      %40 = vector.load %arg24[%c0_22, %c0_23] : memref<1x128xf32, #tpu.memory_space<vmem>>, vector<1x128xf32>
      %41 = vector.broadcast %40 : vector<1x128xf32> to vector<8x128xf32>
      %42 = arith.mulf %39, %41 : vector<8x128xf32>
      %c0_24 = arith.constant 0 : index
      %c0_25 = arith.constant 0 : index
      %43 = vector.load %arg25[%c0_24, %c0_25] : memref<1x128xf32, #tpu.memory_space<vmem>>, vector<1x128xf32>
      %44 = vector.broadcast %43 : vector<1x128xf32> to vector<8x128xf32>
      %45 = arith.addf %42, %44 : vector<8x128xf32>
      %c0_26 = arith.constant 0 : index
      %c0_27 = arith.constant 0 : index
      %46 = vector.load %arg5[%c0_26, %c0_27] : memref<128x64xf32, #tpu.memory_space<vmem>>, vector<128x64xf32>
      %cst_28 = arith.constant dense<0.000000e+00> : vector<8x64xf32>
      %47 = tpu.matmul %45, %46, %cst_28 {dimension_numbers = #tpu.dot_dimension_numbers<[1], [0], [0], [1], [0, 0, 1, 1], [], []>} : vector<8x128xf32>, vector<128x64xf32>, vector<8x64xf32> -> vector<8x64xf32>
      %c0_29 = arith.constant 0 : index
      %c0_30 = arith.constant 0 : index
      %48 = vector.load %arg6[%c0_29, %c0_30] : memref<1x64xf32, #tpu.memory_space<vmem>>, vector<1x64xf32>
      %49 = vector.broadcast %48 : vector<1x64xf32> to vector<8x64xf32>
      %50 = arith.addf %47, %49 : vector<8x64xf32>
      %cst_31 = arith.constant 0.000000e+00 : f32
      %51 = vector.broadcast %cst_31 : f32 to vector<8x64xf32>
      %52 = arith.maximumf %50, %51 : vector<8x64xf32>
      %c0_32 = arith.constant 0 : index
      %c0_33 = arith.constant 0 : index
      %53 = vector.load %arg20[%c0_32, %c0_33] : memref<1x64xf32, #tpu.memory_space<vmem>>, vector<1x64xf32>
      %cst_34 = arith.constant dense<0.000000e+00> : vector<64xf32>
      %54 = vector.multi_reduction <add>, %52, %cst_34 [0] : vector<8x64xf32> to vector<64xf32>
      %55 = vector.shape_cast %54 : vector<64xf32> to vector<1x64xf32>
      %56 = arith.addf %53, %55 : vector<1x64xf32>
      %c0_35 = arith.constant 0 : index
      %c0_36 = arith.constant 0 : index
      %57 = vector.load %arg20[%c0_35, %c0_36] : memref<1x64xf32, #tpu.memory_space<vmem>>, vector<1x64xf32>
      tpu.vector_store %arg20[%c0_35, %c0_36], %56 {strides = array<i32>} : memref<1x64xf32, #tpu.memory_space<vmem>>, vector<1x64xf32>,
      %c0_37 = arith.constant 0 : index
      %c0_38 = arith.constant 0 : index
      %58 = vector.load %arg21[%c0_37, %c0_38] : memref<1x64xf32, #tpu.memory_space<vmem>>, vector<1x64xf32>
      %59 = arith.mulf %52, %52 : vector<8x64xf32>
      %cst_39 = arith.constant dense<0.000000e+00> : vector<64xf32>
      %60 = vector.multi_reduction <add>, %59, %cst_39 [0] : vector<8x64xf32> to vector<64xf32>
      %61 = vector.shape_cast %60 : vector<64xf32> to vector<1x64xf32>
      %62 = arith.addf %58, %61 : vector<1x64xf32>
      %c0_40 = arith.constant 0 : index
      %c0_41 = arith.constant 0 : index
      %63 = vector.load %arg21[%c0_40, %c0_41] : memref<1x64xf32, #tpu.memory_space<vmem>>, vector<1x64xf32>
      tpu.vector_store %arg21[%c0_40, %c0_41], %62 {strides = array<i32>} : memref<1x64xf32, #tpu.memory_space<vmem>>, vector<1x64xf32>,
    } else {
    }
    %c2_i32_12 = arith.constant 2 : i32
    %26 = arith.cmpi eq, %arg0, %c2_i32_12 : i32
    %27 = arith.extui %26 : i1 to i32
    %c0_i32_13 = arith.constant 0 : i32
    %28 = arith.cmpi ne, %27, %c0_i32_13 : i32
    scf.if %28 {
      %c0 = arith.constant 0 : index
      %c0_16 = arith.constant 0 : index
      %32 = vector.load %arg2[%c0, %c0_16] : memref<8x32xf32, #tpu.memory_space<vmem>>, vector<8x32xf32>
      %c0_17 = arith.constant 0 : index
      %c0_18 = arith.constant 0 : index
      %33 = vector.load %arg3[%c0_17, %c0_18] : memref<32x128xf32, #tpu.memory_space<vmem>>, vector<32x128xf32>
      %cst = arith.constant dense<0.000000e+00> : vector<8x128xf32>
      %34 = tpu.matmul %32, %33, %cst {dimension_numbers = #tpu.dot_dimension_numbers<[1], [0], [0], [1], [0, 0, 1, 1], [], []>} : vector<8x32xf32>, vector<32x128xf32>, vector<8x128xf32> -> vector<8x128xf32>
      %c0_19 = arith.constant 0 : index
      %c0_20 = arith.constant 0 : index
      %35 = vector.load %arg4[%c0_19, %c0_20] : memref<1x128xf32, #tpu.memory_space<vmem>>, vector<1x128xf32>
      %36 = vector.broadcast %35 : vector<1x128xf32> to vector<8x128xf32>
      %37 = arith.addf %34, %36 : vector<8x128xf32>
      %cst_21 = arith.constant 0.000000e+00 : f32
      %38 = vector.broadcast %cst_21 : f32 to vector<8x128xf32>
      %39 = arith.maximumf %37, %38 : vector<8x128xf32>
      %c0_22 = arith.constant 0 : index
      %c0_23 = arith.constant 0 : index
      %40 = vector.load %arg24[%c0_22, %c0_23] : memref<1x128xf32, #tpu.memory_space<vmem>>, vector<1x128xf32>
      %41 = vector.broadcast %40 : vector<1x128xf32> to vector<8x128xf32>
      %42 = arith.mulf %39, %41 : vector<8x128xf32>
      %c0_24 = arith.constant 0 : index
      %c0_25 = arith.constant 0 : index
      %43 = vector.load %arg25[%c0_24, %c0_25] : memref<1x128xf32, #tpu.memory_space<vmem>>, vector<1x128xf32>
      %44 = vector.broadcast %43 : vector<1x128xf32> to vector<8x128xf32>
      %45 = arith.addf %42, %44 : vector<8x128xf32>
      %c0_26 = arith.constant 0 : index
      %c0_27 = arith.constant 0 : index
      %46 = vector.load %arg5[%c0_26, %c0_27] : memref<128x64xf32, #tpu.memory_space<vmem>>, vector<128x64xf32>
      %cst_28 = arith.constant dense<0.000000e+00> : vector<8x64xf32>
      %47 = tpu.matmul %45, %46, %cst_28 {dimension_numbers = #tpu.dot_dimension_numbers<[1], [0], [0], [1], [0, 0, 1, 1], [], []>} : vector<8x128xf32>, vector<128x64xf32>, vector<8x64xf32> -> vector<8x64xf32>
      %c0_29 = arith.constant 0 : index
      %c0_30 = arith.constant 0 : index
      %48 = vector.load %arg6[%c0_29, %c0_30] : memref<1x64xf32, #tpu.memory_space<vmem>>, vector<1x64xf32>
      %49 = vector.broadcast %48 : vector<1x64xf32> to vector<8x64xf32>
      %50 = arith.addf %47, %49 : vector<8x64xf32>
      %cst_31 = arith.constant 0.000000e+00 : f32
      %51 = vector.broadcast %cst_31 : f32 to vector<8x64xf32>
      %52 = arith.maximumf %50, %51 : vector<8x64xf32>
      %c0_32 = arith.constant 0 : index
      %c0_33 = arith.constant 0 : index
      %53 = vector.load %arg26[%c0_32, %c0_33] : memref<1x64xf32, #tpu.memory_space<vmem>>, vector<1x64xf32>
      %54 = vector.broadcast %53 : vector<1x64xf32> to vector<8x64xf32>
      %55 = arith.mulf %52, %54 : vector<8x64xf32>
      %c0_34 = arith.constant 0 : index
      %c0_35 = arith.constant 0 : index
      %56 = vector.load %arg27[%c0_34, %c0_35] : memref<1x64xf32, #tpu.memory_space<vmem>>, vector<1x64xf32>
      %57 = vector.broadcast %56 : vector<1x64xf32> to vector<8x64xf32>
      %58 = arith.addf %55, %57 : vector<8x64xf32>
      %c0_36 = arith.constant 0 : index
      %c0_37 = arith.constant 0 : index
      %59 = vector.load %arg7[%c0_36, %c0_37] : memref<64x32xf32, #tpu.memory_space<vmem>>, vector<64x32xf32>
      %cst_38 = arith.constant dense<0.000000e+00> : vector<8x32xf32>
      %60 = tpu.matmul %58, %59, %cst_38 {dimension_numbers = #tpu.dot_dimension_numbers<[1], [0], [0], [1], [0, 0, 1, 1], [], []>} : vector<8x64xf32>, vector<64x32xf32>, vector<8x32xf32> -> vector<8x32xf32>
      %c0_39 = arith.constant 0 : index
      %c0_40 = arith.constant 0 : index
      %61 = vector.load %arg8[%c0_39, %c0_40] : memref<1x32xf32, #tpu.memory_space<vmem>>, vector<1x32xf32>
      %62 = vector.broadcast %61 : vector<1x32xf32> to vector<8x32xf32>
      %63 = arith.addf %60, %62 : vector<8x32xf32>
      %cst_41 = arith.constant 0.000000e+00 : f32
      %64 = vector.broadcast %cst_41 : f32 to vector<8x32xf32>
      %65 = arith.maximumf %63, %64 : vector<8x32xf32>
      %c0_42 = arith.constant 0 : index
      %c0_43 = arith.constant 0 : index
      %66 = vector.load %arg22[%c0_42, %c0_43] : memref<1x32xf32, #tpu.memory_space<vmem>>, vector<1x32xf32>
      %cst_44 = arith.constant dense<0.000000e+00> : vector<32xf32>
      %67 = vector.multi_reduction <add>, %65, %cst_44 [0] : vector<8x32xf32> to vector<32xf32>
      %68 = vector.shape_cast %67 : vector<32xf32> to vector<1x32xf32>
      %69 = arith.addf %66, %68 : vector<1x32xf32>
      %c0_45 = arith.constant 0 : index
      %c0_46 = arith.constant 0 : index
      %70 = vector.load %arg22[%c0_45, %c0_46] : memref<1x32xf32, #tpu.memory_space<vmem>>, vector<1x32xf32>
      tpu.vector_store %arg22[%c0_45, %c0_46], %69 {strides = array<i32>} : memref<1x32xf32, #tpu.memory_space<vmem>>, vector<1x32xf32>,
      %c0_47 = arith.constant 0 : index
      %c0_48 = arith.constant 0 : index
      %71 = vector.load %arg23[%c0_47, %c0_48] : memref<1x32xf32, #tpu.memory_space<vmem>>, vector<1x32xf32>
      %72 = arith.mulf %65, %65 : vector<8x32xf32>
      %cst_49 = arith.constant dense<0.000000e+00> : vector<32xf32>
      %73 = vector.multi_reduction <add>, %72, %cst_49 [0] : vector<8x32xf32> to vector<32xf32>
      %74 = vector.shape_cast %73 : vector<32xf32> to vector<1x32xf32>
      %75 = arith.addf %71, %74 : vector<1x32xf32>
      %c0_50 = arith.constant 0 : index
      %c0_51 = arith.constant 0 : index
      %76 = vector.load %arg23[%c0_50, %c0_51] : memref<1x32xf32, #tpu.memory_space<vmem>>, vector<1x32xf32>
      tpu.vector_store %arg23[%c0_50, %c0_51], %75 {strides = array<i32>} : memref<1x32xf32, #tpu.memory_space<vmem>>, vector<1x32xf32>,
    } else {
    }
    %c3_i32_14 = arith.constant 3 : i32
    %29 = arith.cmpi eq, %arg0, %c3_i32_14 : i32
    %30 = arith.extui %29 : i1 to i32
    %c0_i32_15 = arith.constant 0 : i32
    %31 = arith.cmpi ne, %30, %c0_i32_15 : i32
    scf.if %31 {
      %c0 = arith.constant 0 : index
      %c0_16 = arith.constant 0 : index
      %32 = vector.load %arg2[%c0, %c0_16] : memref<8x32xf32, #tpu.memory_space<vmem>>, vector<8x32xf32>
      %c0_17 = arith.constant 0 : index
      %c0_18 = arith.constant 0 : index
      %33 = vector.load %arg3[%c0_17, %c0_18] : memref<32x128xf32, #tpu.memory_space<vmem>>, vector<32x128xf32>
      %cst = arith.constant dense<0.000000e+00> : vector<8x128xf32>
      %34 = tpu.matmul %32, %33, %cst {dimension_numbers = #tpu.dot_dimension_numbers<[1], [0], [0], [1], [0, 0, 1, 1], [], []>} : vector<8x32xf32>, vector<32x128xf32>, vector<8x128xf32> -> vector<8x128xf32>
      %c0_19 = arith.constant 0 : index
      %c0_20 = arith.constant 0 : index
      %35 = vector.load %arg4[%c0_19, %c0_20] : memref<1x128xf32, #tpu.memory_space<vmem>>, vector<1x128xf32>
      %36 = vector.broadcast %35 : vector<1x128xf32> to vector<8x128xf32>
      %37 = arith.addf %34, %36 : vector<8x128xf32>
      %cst_21 = arith.constant 0.000000e+00 : f32
      %38 = vector.broadcast %cst_21 : f32 to vector<8x128xf32>
      %39 = arith.maximumf %37, %38 : vector<8x128xf32>
      %c0_22 = arith.constant 0 : index
      %c0_23 = arith.constant 0 : index
      %40 = vector.load %arg24[%c0_22, %c0_23] : memref<1x128xf32, #tpu.memory_space<vmem>>, vector<1x128xf32>
      %41 = vector.broadcast %40 : vector<1x128xf32> to vector<8x128xf32>
      %42 = arith.mulf %39, %41 : vector<8x128xf32>
      %c0_24 = arith.constant 0 : index
      %c0_25 = arith.constant 0 : index
      %43 = vector.load %arg25[%c0_24, %c0_25] : memref<1x128xf32, #tpu.memory_space<vmem>>, vector<1x128xf32>
      %44 = vector.broadcast %43 : vector<1x128xf32> to vector<8x128xf32>
      %45 = arith.addf %42, %44 : vector<8x128xf32>
      %c0_26 = arith.constant 0 : index
      %c0_27 = arith.constant 0 : index
      %46 = vector.load %arg5[%c0_26, %c0_27] : memref<128x64xf32, #tpu.memory_space<vmem>>, vector<128x64xf32>
      %cst_28 = arith.constant dense<0.000000e+00> : vector<8x64xf32>
      %47 = tpu.matmul %45, %46, %cst_28 {dimension_numbers = #tpu.dot_dimension_numbers<[1], [0], [0], [1], [0, 0, 1, 1], [], []>} : vector<8x128xf32>, vector<128x64xf32>, vector<8x64xf32> -> vector<8x64xf32>
      %c0_29 = arith.constant 0 : index
      %c0_30 = arith.constant 0 : index
      %48 = vector.load %arg6[%c0_29, %c0_30] : memref<1x64xf32, #tpu.memory_space<vmem>>, vector<1x64xf32>
      %49 = vector.broadcast %48 : vector<1x64xf32> to vector<8x64xf32>
      %50 = arith.addf %47, %49 : vector<8x64xf32>
      %cst_31 = arith.constant 0.000000e+00 : f32
      %51 = vector.broadcast %cst_31 : f32 to vector<8x64xf32>
      %52 = arith.maximumf %50, %51 : vector<8x64xf32>
      %c0_32 = arith.constant 0 : index
      %c0_33 = arith.constant 0 : index
      %53 = vector.load %arg26[%c0_32, %c0_33] : memref<1x64xf32, #tpu.memory_space<vmem>>, vector<1x64xf32>
      %54 = vector.broadcast %53 : vector<1x64xf32> to vector<8x64xf32>
      %55 = arith.mulf %52, %54 : vector<8x64xf32>
      %c0_34 = arith.constant 0 : index
      %c0_35 = arith.constant 0 : index
      %56 = vector.load %arg27[%c0_34, %c0_35] : memref<1x64xf32, #tpu.memory_space<vmem>>, vector<1x64xf32>
      %57 = vector.broadcast %56 : vector<1x64xf32> to vector<8x64xf32>
      %58 = arith.addf %55, %57 : vector<8x64xf32>
      %c0_36 = arith.constant 0 : index
      %c0_37 = arith.constant 0 : index
      %59 = vector.load %arg7[%c0_36, %c0_37] : memref<64x32xf32, #tpu.memory_space<vmem>>, vector<64x32xf32>
      %cst_38 = arith.constant dense<0.000000e+00> : vector<8x32xf32>
      %60 = tpu.matmul %58, %59, %cst_38 {dimension_numbers = #tpu.dot_dimension_numbers<[1], [0], [0], [1], [0, 0, 1, 1], [], []>} : vector<8x64xf32>, vector<64x32xf32>, vector<8x32xf32> -> vector<8x32xf32>
      %c0_39 = arith.constant 0 : index
      %c0_40 = arith.constant 0 : index
      %61 = vector.load %arg8[%c0_39, %c0_40] : memref<1x32xf32, #tpu.memory_space<vmem>>, vector<1x32xf32>
      %62 = vector.broadcast %61 : vector<1x32xf32> to vector<8x32xf32>
      %63 = arith.addf %60, %62 : vector<8x32xf32>
      %cst_41 = arith.constant 0.000000e+00 : f32
      %64 = vector.broadcast %cst_41 : f32 to vector<8x32xf32>
      %65 = arith.maximumf %63, %64 : vector<8x32xf32>
      %c0_42 = arith.constant 0 : index
      %c0_43 = arith.constant 0 : index
      %66 = vector.load %arg28[%c0_42, %c0_43] : memref<1x32xf32, #tpu.memory_space<vmem>>, vector<1x32xf32>
      %67 = vector.broadcast %66 : vector<1x32xf32> to vector<8x32xf32>
      %68 = arith.mulf %65, %67 : vector<8x32xf32>
      %cst_44 = arith.constant dense<0.000000e+00> : vector<8xf32>
      %69 = vector.multi_reduction <add>, %68, %cst_44 [1] : vector<8x32xf32> to vector<8xf32>
      %70 = vector.shape_cast %69 : vector<8xf32> to vector<8x1xf32>
      %c0_45 = arith.constant 0 : index
      %c0_46 = arith.constant 0 : index
      %71 = vector.load %arg29[%c0_45, %c0_46] : memref<1x1xf32, #tpu.memory_space<vmem>>, vector<1x1xf32>
      %72 = vector.broadcast %71 : vector<1x1xf32> to vector<8x1xf32>
      %73 = arith.addf %70, %72 : vector<8x1xf32>
      %c0_47 = arith.constant 0 : index
      %c0_48 = arith.constant 0 : index
      %74 = vector.load %arg17[%c0_47, %c0_48] : memref<8x1xf32, #tpu.memory_space<vmem>>, vector<8x1xf32>
      tpu.vector_store %arg17[%c0_47, %c0_48], %73 {strides = array<i32>} : memref<8x1xf32, #tpu.memory_space<vmem>>, vector<8x1xf32>,
    } else {
    }
    return
  }
  func.func @transform_0(%arg0: i32, %arg1: i32) -> (i32, i32) {
    %c0_i32 = arith.constant 0 : i32
    %c0_i32_0 = arith.constant 0 : i32
    return %arg1, %c0_i32 : i32, i32
  }
  func.func @transform_1(%arg0: i32, %arg1: i32) -> (i32, i32) {
    %c0_i32 = arith.constant 0 : i32
    %c0_i32_0 = arith.constant 0 : i32
    %c0_i32_1 = arith.constant 0 : i32
    return %c0_i32, %c0_i32_0 : i32, i32
  }
  func.func @transform_2(%arg0: i32, %arg1: i32) -> (i32, i32) {
    %c0_i32 = arith.constant 0 : i32
    %c0_i32_0 = arith.constant 0 : i32
    %c0_i32_1 = arith.constant 0 : i32
    return %c0_i32, %c0_i32_0 : i32, i32
  }
  func.func @transform_3(%arg0: i32, %arg1: i32) -> (i32, i32) {
    %c0_i32 = arith.constant 0 : i32
    %c0_i32_0 = arith.constant 0 : i32
    %c0_i32_1 = arith.constant 0 : i32
    return %c0_i32, %c0_i32_0 : i32, i32
  }
  func.func @transform_4(%arg0: i32, %arg1: i32) -> (i32, i32) {
    %c0_i32 = arith.constant 0 : i32
    %c0_i32_0 = arith.constant 0 : i32
    %c0_i32_1 = arith.constant 0 : i32
    return %c0_i32, %c0_i32_0 : i32, i32
  }
  func.func @transform_5(%arg0: i32, %arg1: i32) -> (i32, i32) {
    %c0_i32 = arith.constant 0 : i32
    %c0_i32_0 = arith.constant 0 : i32
    %c0_i32_1 = arith.constant 0 : i32
    return %c0_i32, %c0_i32_0 : i32, i32
  }
  func.func @transform_6(%arg0: i32, %arg1: i32) -> (i32, i32) {
    %c0_i32 = arith.constant 0 : i32
    %c0_i32_0 = arith.constant 0 : i32
    %c0_i32_1 = arith.constant 0 : i32
    return %c0_i32, %c0_i32_0 : i32, i32
  }
  func.func @transform_7(%arg0: i32, %arg1: i32) -> (i32, i32) {
    %c0_i32 = arith.constant 0 : i32
    %c0_i32_0 = arith.constant 0 : i32
    %c0_i32_1 = arith.constant 0 : i32
    return %c0_i32, %c0_i32_0 : i32, i32
  }
  func.func @transform_8(%arg0: i32, %arg1: i32) -> (i32, i32) {
    %c0_i32 = arith.constant 0 : i32
    %c0_i32_0 = arith.constant 0 : i32
    %c0_i32_1 = arith.constant 0 : i32
    return %c0_i32, %c0_i32_0 : i32, i32
  }
  func.func @transform_9(%arg0: i32, %arg1: i32) -> (i32, i32) {
    %c0_i32 = arith.constant 0 : i32
    %c0_i32_0 = arith.constant 0 : i32
    %c0_i32_1 = arith.constant 0 : i32
    return %c0_i32, %c0_i32_0 : i32, i32
  }
  func.func @transform_10(%arg0: i32, %arg1: i32) -> (i32, i32) {
    %c0_i32 = arith.constant 0 : i32
    %c0_i32_0 = arith.constant 0 : i32
    %c0_i32_1 = arith.constant 0 : i32
    return %c0_i32, %c0_i32_0 : i32, i32
  }
  func.func @transform_11(%arg0: i32, %arg1: i32) -> (i32, i32) {
    %c0_i32 = arith.constant 0 : i32
    %c0_i32_0 = arith.constant 0 : i32
    %c0_i32_1 = arith.constant 0 : i32
    return %c0_i32, %c0_i32_0 : i32, i32
  }
  func.func @transform_12(%arg0: i32, %arg1: i32) -> (i32, i32) {
    %c0_i32 = arith.constant 0 : i32
    %c0_i32_0 = arith.constant 0 : i32
    %c0_i32_1 = arith.constant 0 : i32
    return %c0_i32, %c0_i32_0 : i32, i32
  }
  func.func @transform_13(%arg0: i32, %arg1: i32) -> (i32, i32) {
    %c0_i32 = arith.constant 0 : i32
    %c0_i32_0 = arith.constant 0 : i32
    %c0_i32_1 = arith.constant 0 : i32
    return %c0_i32, %c0_i32_0 : i32, i32
  }
  func.func @transform_14(%arg0: i32, %arg1: i32) -> (i32, i32) {
    %c0_i32 = arith.constant 0 : i32
    %c0_i32_0 = arith.constant 0 : i32
    %c0_i32_1 = arith.constant 0 : i32
    return %c0_i32, %c0_i32_0 : i32, i32
  }
  func.func @transform_15(%arg0: i32, %arg1: i32) -> (i32, i32) {
    %c0_i32 = arith.constant 0 : i32
    %c0_i32_0 = arith.constant 0 : i32
    return %arg1, %c0_i32 : i32, i32
  }
}

</mosaic_0001>

<bundles_post_ra>
// kernel: tpu_custom_call.1
= control target key start
LH: loop header
LB: loop body
LE: loop exit
PB: predicated region body
PF: predicated region fallthrough
CT: control target
= control target key end

     0   :  { %s2251_s20 = smov 0   ;;  %s2253_s21 = smov 0   ;;  %s2633_s0 = inlined_call_operand.vmem [shape: f32[8,32], index: 0, kind: input, shape index: {}]   ;;  %s2634_s1 = inlined_call_operand.vmem [shape: f32[32,128], index: 1, kind: input, shape index: {}]   ;;  %s2635_s2 = inlined_call_operand.vmem [shape: f32[1,128], index: 2, kind: input, shape index: {}]   ;;  %s2636_s3 = inlined_call_operand.vmem [shape: f32[128,64], index: 3, kind: input, shape index: {}]   ;;  %s2637_s4 = inlined_call_operand.vmem [shape: f32[1,64], index: 4, kind: input, shape index: {}]   ;;  %s2638_s5 = inlined_call_operand.vmem [shape: f32[64,32], index: 5, kind: input, shape index: {}]   ;;  %s2639_s6 = inlined_call_operand.vmem [shape: f32[1,32], index: 6, kind: input, shape index: {}]   ;;  %s2640_s7 = inlined_call_operand.vmem [shape: f32[1,32], index: 7, kind: input, shape index: {}]   ;;  %s2641_s8 = inlined_call_operand.<no memory space> [shape: f32[1,1], index: 8, kind: input, shape index: {}]   ;;  %s2642_s9 = inlined_call_operand.vmem [shape: f32[1,128], index: 9, kind: input, shape index: {}]   ;;  %s2643_s10 = inlined_call_operand.vmem [shape: f32[1,128], index: 10, kind: input, shape index: {}]   ;;  %s2644_s11 = inlined_call_operand.vmem [shape: f32[1,64], index: 11, kind: input, shape index: {}]   ;;  %s2645_s12 = inlined_call_operand.vmem [shape: f32[1,64], index: 12, kind: input, shape index: {}]   ;;  %s2646_s13 = inlined_call_operand.vmem [shape: f32[1,32], index: 13, kind: input, shape index: {}]   ;;  %s2647_s14 = inlined_call_operand.vmem [shape: f32[1,32], index: 14, kind: input, shape index: {}]   ;;  %s2648_s15 = inlined_call_operand.vmem [shape: f32[8,1], index: 15, kind: output, shape index: {}]  }
   0x1   :  { %v20_v0 = vstv %s2641_s8  ;;  %s2255_s22 = smov 0  }
   0x2   :  { %21 = vst [vmem:[#allocation14] sm:$0x1] %v20_v0 }
   0x3 LB: > { %s39_s8 = sadd.s32 1, %s2147_s21  ;;  %p1645_p0 = scmp.ge.s32.totalorder %s2151_s22, 1  ;;  %s2151_s22 = sphi %s2255_s22, %s27_s22   ;;  %s2147_s21 = sphi %s2253_s21, %s2650_s21   ;;  %s2143_s20 = sphi %s2251_s20, %s2649_s20  }
   0x4   : > { %p41_p1 = scmp.ge.s32.totalorder %s39_s8, 4  ;;  %p450_p2 = scmp.lt.s32.totalorder %s2151_s22, 5 }
   0x6   : > { %s2652_s8 = smov (%p41_p1, %s39_s8), 0  ;;  %p451_p3 = pnand %p1645_p0, %p450_p2 }
   0x7   : > { %p504_p4 = scmp.eq.s32.totalorder (!%p451_p3), %s2143_s20, 0 }
   0x8   : > { %454 = sbr.rel (%p451_p3) target bundleno = 2468 (0x9a4), region = 80 }
   0xf   : > { %509 = sbr.rel (!%p504_p4) target bundleno = 22 (0x16), region = 84  ;;  %v2153_v1 = vmov (%p504_p4), 0.0  }
  0x10   : > { %510 = vst [vmem:[#allocation2] sm:$0x1] (%p504_p4), %v2153_v1  ;;  %511 = vst [vmem:[#allocation3] sm:$0x1] (%p504_p4), %v2153_v1 }
  0x16 PF: > { %p512_p5 = scmp.eq.s32.totalorder %s2143_s20, 1 }
  0x17   : > { %v517_v2 = vld [vmem:[#allocation2] sm:$0x1] (%p512_p5)  ;;  %v519_v3 = vld [vmem:[#allocation3] sm:$0x1] (%p512_p5)  ;;  %vm533_vm0 = vcmask (%p512_p5), 516096   ;;  %v2154_v6 = vmov (%p512_p5), 0.0  }
  0x18   : > { %516 = sbr.rel (!%p512_p5) target bundleno = 52 (0x34), region = 88  ;;  %v518_v4 = vmul.f32 (%p512_p5), 0.125, %v517_v2  ;;  %v520_v5 = vmul.f32 (%p512_p5), 0.125, %v519_v3  ;;  %534 = vst.msk [vmem:[#allocation4] sm:$0x1] (%p512_p5), %vm533_vm0, %v2154_v6 }
  0x19   : > { %535 = vst.msk [vmem:[#allocation5] sm:$0x1] (%p512_p5), %vm533_vm0, %v2154_v6  ;;  %v524_v11 = vld [vmem:[%s2642_s9] sm:$0x1] (%p512_p5) }
  0x1a   : > { %v521_v7 = vmul.f32 (%p512_p5), %v518_v4, %v518_v4  ;;  %v528_v14 = vld [vmem:[%s2643_s10] sm:$0x1] (%p512_p5) }
  0x1c   : > { %v522_v8 = vsub.f32 (%p512_p5), %v520_v5, %v521_v7 }
  0x1e   : > { %v523_v9 = vmax.f32 (%p512_p5), %v522_v8, 0.0 }
  0x20   : > { %v525_v10 = vadd.f32 1e-05, %v523_v9 }
  0x22   : > { %2123 = vrsqrt.f32 %v525_v10 }
  0x2c   : > { %v2124_v12 = vpop.eup %2123 }
  0x2d   : > { %v527_v13 = vmul.f32 %v2124_v12, %v524_v11 }
  0x2f   : > { %531 = vst [vmem:[#allocation8] sm:$0x1] %v527_v13  ;;  %v529_v15 = vmul.f32 %v527_v13, %v518_v4 }
  0x31   : > { %v530_v16 = vsub.f32 %v528_v14, %v529_v15 }
  0x33   : > { %532 = vst [vmem:[#allocation9] sm:$0x1] %v530_v16 }
  0x34 PF: > { %p536_p6 = scmp.eq.s32.totalorder %s2143_s20, 2 }
  0x35   : > { %v541_v17 = vld [vmem:[#allocation4] sm:$0x1] (%p536_p6)  ;;  %v543_v18 = vld [vmem:[#allocation5] sm:$0x1] (%p536_p6)  ;;  %vm558_vm1 = vcmask (%p536_p6), 253952   ;;  %v2155_v22 = vmov (%p536_p6), 0.0  }
  0x36   : > { %540 = sbr.rel (!%p536_p6) target bundleno = 82 (0x52), region = 92  ;;  %v542_v19 = vmul.f32 (%p536_p6), 0.125, %v541_v17  ;;  %v544_v20 = vmul.f32 (%p536_p6), 0.125, %v543_v18  ;;  %559 = vst.msk [vmem:[#allocation6] sm:$0x1] (%p536_p6), %vm558_vm1, %v2155_v22  ;;  %vm555_vm2 = vcmask (%p536_p6), 516096  }
  0x37   : > { %560 = vst.msk [vmem:[#allocation7] sm:$0x1] (%p536_p6), %vm558_vm1, %v2155_v22  ;;  %v548_v26 = vld [vmem:[%s2644_s11] sm:$0x1] (%p536_p6) }
  0x38   : > { %v545_v21 = vmul.f32 (%p536_p6), %v542_v19, %v542_v19  ;;  %v552_v29 = vld [vmem:[%s2645_s12] sm:$0x1] (%p536_p6) }
  0x3a   : > { %v546_v23 = vsub.f32 (%p536_p6), %v544_v20, %v545_v21 }
  0x3c   : > { %v547_v24 = vmax.f32 (%p536_p6), %v546_v23, 0.0 }
  0x3e   : > { %v549_v25 = vadd.f32 1e-05, %v547_v24 }
  0x40   : > { %2125 = vrsqrt.f32 %v549_v25 }
  0x4a   : > { %v2126_v27 = vpop.eup %2125 }
  0x4b   : > { %v551_v28 = vmul.f32 %v2126_v27, %v548_v26 }
  0x4d   : > { %556 = vst.msk [vmem:[#allocation10] sm:$0x1] %vm555_vm2, %v551_v28  ;;  %v553_v30 = vmul.f32 %v551_v28, %v542_v19 }
  0x4f   : > { %v554_v31 = vsub.f32 %v552_v29, %v553_v30 }
  0x51   : > { %557 = vst.msk [vmem:[#allocation11] sm:$0x1] %vm555_vm2, %v554_v31 }
  0x52 PF: > { %p561_p7 = scmp.eq.s32.totalorder %s2143_s20, 3 }
  0x53   : > { %v566_v32 = vld [vmem:[#allocation6] sm:$0x1] (%p561_p7)  ;;  %v568_v33 = vld [vmem:[#allocation7] sm:$0x1] (%p561_p7)  ;;  %v573_v40 = vld [vmem:[%s2646_s13] sm:$0x1] (%p561_p7) }
  0x54   : > { %565 = sbr.rel (!%p561_p7) target bundleno = 259 (0x103), region = 96  ;;  %v567_v34 = vmul.f32 (%p561_p7), 0.125, %v566_v32  ;;  %v569_v35 = vmul.f32 (%p561_p7), 0.125, %v568_v33  ;;  %v580_v42 = vld [vmem:[%s2640_s7] sm:$0x1] (%p561_p7)  ;;  %vm582_vm3 = vcmask (%p561_p7), 253952  }
  0x55   : > { %v577_v44 = vld [vmem:[%s2647_s14] sm:$0x1] (%p561_p7)  ;;  %v584_v51 = vld [vmem:[#allocation14] sm:$0x1] (%p561_p7)  ;;  %vm591_vm4 = vcmask (%p561_p7), 0  }
  0x56   : > { %v570_v36 = vmul.f32 (%p561_p7), %v567_v34, %v567_v34  ;;  %v585_v47 = vld [vmem:[%s2640_s7] sm:$0x1] (%p561_p7) }
  0x58   : > { %v571_v37 = vsub.f32 (%p561_p7), %v569_v35, %v570_v36 }
  0x5a   : > { %v572_v38 = vmax.f32 (%p561_p7), %v571_v37, 0.0 }
  0x5c   : > { %v574_v39 = vadd.f32 1e-05, %v572_v38 }
  0x5e   : > { %2127 = vrsqrt.f32 %v574_v39 }
  0x68   : > { %v2128_v41 = vpop.eup %2127 }
  0x69   : > { %v576_v43 = vmul.f32 %v2128_v41, %v573_v40 }
  0x6b   : > { %v578_v45 = vmul.f32 %v576_v43, %v567_v34  ;;  %v581_v46 = vmul.f32 %v580_v42, %v576_v43 }
  0x6d   : > { %v579_v48 = vsub.f32 %v577_v44, %v578_v45  ;;  %583 = vst.msk [vmem:[#allocation12] sm:$0x1] %vm582_vm3, %v581_v46 }
  0x6f   : > { %v586_v49 = vmul.f32 %v585_v47, %v579_v48 }
  0x71   : > { %v587_v50 = vsel %vm582_vm3, %v586_v49, 0.0 }
  0x72   : > { %588 = vadd.xlane.f32.xlu0 %v587_v50 }
  0xff   : > { %v589_v52 = vpop.xlane.xlu0 %588 }
 0x100   : > { %v590_v53 = vadd.f32 %v589_v52, %v584_v51 }
 0x102   : > { %592 = vst.msk [vmem:[#allocation13] sm:$0x1] %vm591_vm4, %v590_v53 }
 0x103 PF: > { %p1650_p8 = scmp.ne.s32.totalorder %s2143_s20, 0 }
 0x104   : > { %v597_v54 = vld [vmem:[%s2634_s1] sm:$0xff] (!%p1650_p8)  ;;  %v598_v55 = vld [vmem:[%s2634_s1 + $0x8] sm:$0xff] (!%p1650_p8)  ;;  %v599_v56 = vld [vmem:[%s2634_s1 + $0x10] sm:$0xff] (!%p1650_p8)  ;;  %v2156_v57 = vmov (!%p1650_p8), 0.0|0.0   ;;  %vm2157_vm5 = vmmov (!%p1650_p8), 0   ;;  %v2158_v60 = vmov (!%p1650_p8), 0.0  }
 0x105   : > { %595 = sbr.rel (%p1650_p8) target bundleno = 503 (0x1f7), region = 100  ;;  %1964 = vmatprep.subr.bf16.mxu0 (!%p1650_p8), %v2156_v57  ;;  %v1965_v58 = vpack.c.bf16 (!%p1650_p8), %v598_v55, %v597_v54  ;;  %v600_v59 = vld [vmem:[%s2634_s1 + $0x18] sm:$0xff] (!%p1650_p8)  ;;  %1785 = vmatprep.mubr.msk.f32.mxu0 (!%p1650_p8), %vm2157_vm5, %v2158_v60  ;;  %v596_v62 = vld [vmem:[%s2633_s0] sm:$0xff] (!%p1650_p8)  ;;  %vm608_vm6 = vcmask (!%p1650_p8), 261120  }
 0x106   : > { %v1968_v61 = vpack.c.bf16 (!%p1650_p8), %v600_v59, %v599_v56  ;;  %v1651_v63 = vld [vmem:[%s2635_s2] ss:$0 sm:$0xff] (!%p1650_p8)  ;;  %v692_v17 = vld [vmem:[#allocation3] sm:$0x1] (!%p1650_p8) }
 0x107   : > { %1966 = vmatpush3.bf16.msra.mxu0 (!%p1650_p8), %v1965_v58  ;;  %v683_v14 = vld [vmem:[#allocation2] sm:$0x1] (!%p1650_p8) }
 0x108   : > { %1967 = vmatprep.subr.bf16.mxu0 (!%p1650_p8), %v2156_v57 }
 0x10b   : > { %1969 = vmatpush3.bf16.msra.mxu0 (!%p1650_p8), %v1968_v61 }
 0x10e   : > { %1786 = vmatmul.mubr.msk.f32.vlgmr.msra.gmra.mrb[0].mxu0 %vm608_vm6, %v596_v62 }
 0x1e1   : > { %v678_v0 = vpop.f32.mrb[0].mxu0 }
 0x1e2   : > { %v679_v1 = vadd.f32 %v1651_v63, %v678_v0  ;;  %v1787_v2 = vpop.f32.mrb[1].mxu0 }
 0x1e4   : > { %v682_v3 = vmax.f32 %v679_v1, 0.0 }
 0x1e6   : > { %v684_v4 = vrot.slane %v682_v3, 4  ;;  %v693_v5 = vmul.f32 %v682_v3, %v682_v3 }
 0x1e8   : > { %v685_v6 = vadd.f32 %v684_v4, %v682_v3  ;;  %v694_v7 = vrot.slane %v693_v5, 4 }
 0x1ea   : > { %v686_v8 = vrot.slane %v685_v6, 2  ;;  %v695_v9 = vadd.f32 %v694_v7, %v693_v5 }
 0x1ec   : > { %v687_v10 = vadd.f32 %v686_v8, %v685_v6  ;;  %v696_v11 = vrot.slane %v695_v9, 2 }
 0x1ee   : > { %v688_v12 = vrot.slane %v687_v10, 1  ;;  %v697_v13 = vadd.f32 %v696_v11, %v695_v9 }
 0x1f0   : > { %v689_v15 = vadd.f32 %v688_v12, %v687_v10  ;;  %v698_v16 = vrot.slane %v697_v13, 1 }
 0x1f2   : > { %v690_v18 = vadd.f32 %v689_v15, %v683_v14  ;;  %v699_v19 = vadd.f32 %v698_v16, %v697_v13 }
 0x1f4   : > { %691 = vst [vmem:[#allocation2] sm:$0x1] %v690_v18  ;;  %v700_v20 = vadd.f32 %v699_v19, %v692_v17 }
 0x1f6   : > { %701 = vst [vmem:[#allocation3] sm:$0x1] %v700_v20 }
 0x1f7 PF: > { %p1653_p9 = scmp.ne.s32.totalorder %s2143_s20, 1 }
 0x1f8   : > { %v706_v21 = vld [vmem:[%s2634_s1] sm:$0xff] (!%p1653_p9)  ;;  %v707_v22 = vld [vmem:[%s2634_s1 + $0x8] sm:$0xff] (!%p1653_p9)  ;;  %v708_v23 = vld [vmem:[%s2634_s1 + $0x10] sm:$0xff] (!%p1653_p9)  ;;  %v2159_v24 = vmov (!%p1653_p9), 0.0|0.0   ;;  %vm2160_vm7 = vmmov (!%p1653_p9), 0   ;;  %v2161_v27 = vmov (!%p1653_p9), 0.0  }
 0x1f9   : > { %704 = sbr.rel (%p1653_p9) target bundleno = 968 (0x3c8), region = 104  ;;  %1970 = vmatprep.subr.bf16.mxu0 (!%p1653_p9), %v2159_v24  ;;  %v1971_v25 = vpack.c.bf16 (!%p1653_p9), %v707_v22, %v706_v21  ;;  %v709_v26 = vld [vmem:[%s2634_s1 + $0x18] sm:$0xff] (!%p1653_p9)  ;;  %1796 = vmatprep.mubr.msk.f32.mxu0 (!%p1653_p9), %vm2160_vm7, %v2161_v27  ;;  %v808_v28 = vld [vmem:[%s2636_s3] sm:$0xff] (!%p1653_p9)  ;;  %v809_v29 = vld [vmem:[%s2636_s3 + $0x8] sm:$0xff] (!%p1653_p9)  ;;  %vm717_vm8 = vcmask (!%p1653_p9), 261120   ;;  %vm903_vm9 = vcmask (!%p1653_p9), 523264  }
 0x1fa   : > { %1976 = vmatprep.subr.bf16.mxu1 (!%p1653_p9), %v2159_v24  ;;  %v810_v30 = vld [vmem:[%s2636_s3 + $0x10] sm:$0xff] (!%p1653_p9)  ;;  %v811_v31 = vld [vmem:[%s2636_s3 + $0x18] sm:$0xff] (!%p1653_p9)  ;;  %1831 = vmatprep.mubr.msk.f32.mxu1 (!%p1653_p9), %vm2160_vm7, %v2161_v27  ;;  %v1974_v32 = vpack.c.bf16 (!%p1653_p9), %v709_v26, %v708_v23  ;;  %v1977_v33 = vpack.c.bf16 (!%p1653_p9), %v809_v29, %v808_v28  ;;  %v812_v35 = vld [vmem:[%s2636_s3 + $0x20] sm:$0xff] (!%p1653_p9)  ;;  %vm912_vm10 = vcmask (!%p1653_p9), 516096  }
 0x1fb   : > { %1972 = vmatpush3.bf16.msra.mxu0 (!%p1653_p9), %v1971_v25  ;;  %v1980_v34 = vpack.c.bf16 (!%p1653_p9), %v811_v31, %v810_v30  ;;  %v813_v36 = vld [vmem:[%s2636_s3 + $0x28] sm:$0xff] (!%p1653_p9)  ;;  %v705_v37 = vld [vmem:[%s2633_s0] sm:$0xff] (!%p1653_p9)  ;;  %v814_v39 = vld [vmem:[%s2636_s3 + $0x30] sm:$0xff] (!%p1653_p9) }
 0x1fc   : > { %1973 = vmatprep.subr.bf16.mxu0 (!%p1653_p9), %v2159_v24  ;;  %1978 = vmatpush3.bf16.msra.mxu1 (!%p1653_p9), %v1977_v33  ;;  %v1983_v38 = vpack.c.bf16 (!%p1653_p9), %v813_v36, %v812_v35  ;;  %v815_v40 = vld [vmem:[%s2636_s3 + $0x38] sm:$0xff] (!%p1653_p9)  ;;  %v816_v42 = vld [vmem:[%s2636_s3 + $0x40] sm:$0xff] (!%p1653_p9)  ;;  %v817_v43 = vld [vmem:[%s2636_s3 + $0x48] sm:$0xff] (!%p1653_p9) }
 0x1fd   : > { %1979 = vmatprep.subr.bf16.mxu1 (!%p1653_p9), %v2159_v24  ;;  %v1986_v41 = vpack.c.bf16 (!%p1653_p9), %v815_v40, %v814_v39  ;;  %v1989_v44 = vpack.c.bf16 (!%p1653_p9), %v817_v43, %v816_v42  ;;  %v818_v45 = vld [vmem:[%s2636_s3 + $0x50] sm:$0xff] (!%p1653_p9)  ;;  %v819_v46 = vld [vmem:[%s2636_s3 + $0x58] sm:$0xff] (!%p1653_p9)  ;;  %v820_v48 = vld [vmem:[%s2636_s3 + $0x60] sm:$0xff] (!%p1653_p9) }
 0x1fe   : > { %v1992_v47 = vpack.c.bf16 (!%p1653_p9), %v819_v46, %v818_v45  ;;  %v821_v49 = vld [vmem:[%s2636_s3 + $0x68] sm:$0xff] (!%p1653_p9)  ;;  %v822_v51 = vld [vmem:[%s2636_s3 + $0x70] sm:$0xff] (!%p1653_p9)  ;;  %v823_v52 = vld [vmem:[%s2636_s3 + $0x78] sm:$0xff] (!%p1653_p9) }
 0x1ff   : > { %1975 = vmatpush3.bf16.msra.mxu0 (!%p1653_p9), %v1974_v32  ;;  %v1995_v50 = vpack.c.bf16 (!%p1653_p9), %v821_v49, %v820_v48  ;;  %v1998_v53 = vpack.c.bf16 (!%p1653_p9), %v823_v52, %v822_v51  ;;  %v1654_v54 = vld [vmem:[%s2635_s2] ss:$0 sm:$0xff] (!%p1653_p9)  ;;  %v1656_v58 = vld [vmem:[#allocation8] ss:$0 sm:$0xff] (!%p1653_p9)  ;;  %v1657_v60 = vld [vmem:[#allocation9] ss:$0 sm:$0xff] (!%p1653_p9) }
 0x200   : > { %1981 = vmatpush3.bf16.msra.mxu1 %v1980_v34  ;;  %v1658_v63 = vld [vmem:[%s2637_s4] ss:$0 sm:$0xff]  ;;  %v902_v16 = vld [vmem:[#allocation4] sm:$0x1]  ;;  %v914_v19 = vld [vmem:[#allocation5] sm:$0x1] }
 0x201   : > { %1982 = vmatprep.subr.bf16.mxu1 %v2159_v24 }
 0x202   : > { %1797 = vmatmul.mubr.msk.f32.vlgmr.msra.gmra.mrb[0].mxu0 %vm717_vm8, %v705_v37 }
 0x204   : > { %1984 = vmatpush3.bf16.msra.mxu1 %v1983_v38 }
 0x205   : > { %1985 = vmatprep.subr.bf16.mxu1 %v2159_v24 }
 0x208   : > { %1987 = vmatpush3.bf16.msra.mxu1 %v1986_v41 }
 0x209   : > { %1988 = vmatprep.subr.bf16.mxu1 %v2159_v24 }
 0x20c   : > { %1990 = vmatpush3.bf16.msra.mxu1 %v1989_v44 }
 0x20d   : > { %1991 = vmatprep.subr.bf16.mxu1 %v2159_v24 }
 0x210   : > { %1993 = vmatpush3.bf16.msra.mxu1 %v1992_v47 }
 0x211   : > { %1994 = vmatprep.subr.bf16.mxu1 %v2159_v24 }
 0x214   : > { %1996 = vmatpush3.bf16.msra.mxu1 %v1995_v50 }
 0x215   : > { %1997 = vmatprep.subr.bf16.mxu1 %v2159_v24 }
 0x218   : > { %1999 = vmatpush3.bf16.msra.mxu1 %v1998_v53 }
 0x2d5   : > { %v787_v55 = vpop.f32.mrb[0].mxu0 }
 0x2d6   : > { %v788_v56 = vadd.f32 %v1654_v54, %v787_v55  ;;  %v1798_v57 = vpop.f32.mrb[1].mxu0 }
 0x2d8   : > { %v791_v59 = vmax.f32 %v788_v56, 0.0 }
 0x2da   : > { %v799_v61 = vmul.f32 %v1656_v58, %v791_v59 }
 0x2dc   : > { %v807_v62 = vadd.f32 %v1657_v60, %v799_v61 }
 0x2de   : > { %1832 = vmatmul.mubr.f32.vlgmr.msra.gmra.mrb[0].mxu1 %v807_v62 }
 0x3b1   : > { %v897_v0 = vpop.f32.mrb[0].mxu1 }
 0x3b2   : > { %v898_v1 = vadd.f32 %v1658_v63, %v897_v0  ;;  %v1833_v2 = vpop.f32.mrb[1].mxu1 }
 0x3b4   : > { %v901_v3 = vmax.f32 %v898_v1, 0.0 }
 0x3b6   : > { %v904_v4 = vsel %vm903_vm9, %v901_v3, 0.0  ;;  %v915_v5 = vmul.f32 %v901_v3, %v901_v3 }
 0x3b7   : > { %v905_v6 = vrot.slane %v904_v4, 4 }
 0x3b8   : > { %v916_v7 = vsel %vm903_vm9, %v915_v5, 0.0 }
 0x3b9   : > { %v906_v8 = vadd.f32 %v905_v6, %v904_v4  ;;  %v917_v9 = vrot.slane %v916_v7, 4 }
 0x3bb   : > { %v907_v10 = vrot.slane %v906_v8, 2  ;;  %v918_v11 = vadd.f32 %v917_v9, %v916_v7 }
 0x3bd   : > { %v908_v12 = vadd.f32 %v907_v10, %v906_v8  ;;  %v919_v13 = vrot.slane %v918_v11, 2 }
 0x3bf   : > { %v909_v14 = vrot.slane %v908_v12, 1  ;;  %v920_v15 = vadd.f32 %v919_v13, %v918_v11 }
 0x3c1   : > { %v910_v17 = vadd.f32 %v909_v14, %v908_v12  ;;  %v921_v18 = vrot.slane %v920_v15, 1 }
 0x3c3   : > { %v911_v20 = vadd.f32 %v910_v17, %v902_v16  ;;  %v922_v21 = vadd.f32 %v921_v18, %v920_v15 }
 0x3c5   : > { %913 = vst.msk [vmem:[#allocation4] sm:$0x1] %vm912_vm10, %v911_v20  ;;  %v923_v22 = vadd.f32 %v922_v21, %v914_v19 }
 0x3c7   : > { %924 = vst.msk [vmem:[#allocation5] sm:$0x1] %vm912_vm10, %v923_v22 }
 0x3c8 PF: > { %p1659_p10 = scmp.ne.s32.totalorder %s2143_s20, 2 }
 0x3c9   : > { %v929_v23 = vld [vmem:[%s2634_s1] sm:$0xff] (!%p1659_p10)  ;;  %v930_v24 = vld [vmem:[%s2634_s1 + $0x8] sm:$0xff] (!%p1659_p10)  ;;  %v931_v25 = vld [vmem:[%s2634_s1 + $0x10] sm:$0xff] (!%p1659_p10)  ;;  %v2162_v26 = vmov (!%p1659_p10), 0.0|0.0   ;;  %vm2163_vm11 = vmmov (!%p1659_p10), 0   ;;  %v2164_v29 = vmov (!%p1659_p10), 0.0  }
 0x3ca   : > { %927 = sbr.rel (%p1659_p10) target bundleno = 1653 (0x675), region = 108  ;;  %2000 = vmatprep.subr.bf16.mxu0 (!%p1659_p10), %v2162_v26  ;;  %v2001_v27 = vpack.c.bf16 (!%p1659_p10), %v930_v24, %v929_v23  ;;  %v932_v28 = vld [vmem:[%s2634_s1 + $0x18] sm:$0xff] (!%p1659_p10)  ;;  %1842 = vmatprep.mubr.msk.f32.mxu0 (!%p1659_p10), %vm2163_vm11, %v2164_v29  ;;  %v1031_v30 = vld [vmem:[%s2636_s3] sm:$0xff] (!%p1659_p10)  ;;  %v1032_v31 = vld [vmem:[%s2636_s3 + $0x8] sm:$0xff] (!%p1659_p10)  ;;  %vm940_vm12 = vcmask (!%p1659_p10), 261120   ;;  %vm1156_vm13 = vcmask (!%p1659_p10), 523264  }
 0x3cb   : > { %2006 = vmatprep.subr.bf16.mxu1 (!%p1659_p10), %v2162_v26  ;;  %v1033_v32 = vld [vmem:[%s2636_s3 + $0x10] sm:$0xff] (!%p1659_p10)  ;;  %v1034_v33 = vld [vmem:[%s2636_s3 + $0x18] sm:$0xff] (!%p1659_p10)  ;;  %1877 = vmatprep.mubr.msk.f32.mxu1 (!%p1659_p10), %vm2163_vm11, %v2164_v29  ;;  %v2004_v34 = vpack.c.bf16 (!%p1659_p10), %v932_v28, %v931_v25  ;;  %v2007_v35 = vpack.c.bf16 (!%p1659_p10), %v1032_v31, %v1031_v30  ;;  %v1035_v37 = vld [vmem:[%s2636_s3 + $0x20] sm:$0xff] (!%p1659_p10)  ;;  %vm1240_vm14 = vcmask (!%p1659_p10), 253952  }
 0x3cc   : > { %2002 = vmatpush3.bf16.msra.mxu0 (!%p1659_p10), %v2001_v27  ;;  %v2010_v36 = vpack.c.bf16 (!%p1659_p10), %v1034_v33, %v1033_v32  ;;  %v1036_v38 = vld [vmem:[%s2636_s3 + $0x28] sm:$0xff] (!%p1659_p10)  ;;  %v928_v39 = vld [vmem:[%s2633_s0] sm:$0xff] (!%p1659_p10)  ;;  %v1037_v41 = vld [vmem:[%s2636_s3 + $0x30] sm:$0xff] (!%p1659_p10) }
 0x3cd   : > { %2003 = vmatprep.subr.bf16.mxu0 (!%p1659_p10), %v2162_v26  ;;  %2008 = vmatpush3.bf16.msra.mxu1 (!%p1659_p10), %v2007_v35  ;;  %v2013_v40 = vpack.c.bf16 (!%p1659_p10), %v1036_v38, %v1035_v37  ;;  %v1038_v42 = vld [vmem:[%s2636_s3 + $0x38] sm:$0xff] (!%p1659_p10)  ;;  %v1039_v44 = vld [vmem:[%s2636_s3 + $0x40] sm:$0xff] (!%p1659_p10)  ;;  %v1040_v45 = vld [vmem:[%s2636_s3 + $0x48] sm:$0xff] (!%p1659_p10) }
 0x3ce   : > { %2009 = vmatprep.subr.bf16.mxu1 (!%p1659_p10), %v2162_v26  ;;  %v2016_v43 = vpack.c.bf16 (!%p1659_p10), %v1038_v42, %v1037_v41  ;;  %v2019_v46 = vpack.c.bf16 (!%p1659_p10), %v1040_v45, %v1039_v44  ;;  %v1041_v47 = vld [vmem:[%s2636_s3 + $0x50] sm:$0xff] (!%p1659_p10)  ;;  %v1042_v48 = vld [vmem:[%s2636_s3 + $0x58] sm:$0xff] (!%p1659_p10)  ;;  %v1043_v50 = vld [vmem:[%s2636_s3 + $0x60] sm:$0xff] (!%p1659_p10) }
 0x3cf   : > { %v2022_v49 = vpack.c.bf16 (!%p1659_p10), %v1042_v48, %v1041_v47  ;;  %v1044_v51 = vld [vmem:[%s2636_s3 + $0x68] sm:$0xff] (!%p1659_p10)  ;;  %v1045_v53 = vld [vmem:[%s2636_s3 + $0x70] sm:$0xff] (!%p1659_p10)  ;;  %v1046_v54 = vld [vmem:[%s2636_s3 + $0x78] sm:$0xff] (!%p1659_p10) }
 0x3d0   : > { %2005 = vmatpush3.bf16.msra.mxu0 (!%p1659_p10), %v2004_v34  ;;  %v2025_v52 = vpack.c.bf16 (!%p1659_p10), %v1044_v51, %v1043_v50  ;;  %v2028_v55 = vpack.c.bf16 (!%p1659_p10), %v1046_v54, %v1045_v53  ;;  %v1141_v56 = vld [vmem:[%s2638_s5] sm:$0xff] (!%p1659_p10)  ;;  %v1142_v57 = vld [vmem:[%s2638_s5 + $0x8] sm:$0xff] (!%p1659_p10)  ;;  %v1143_v58 = vld [vmem:[%s2638_s5 + $0x10] sm:$0xff] (!%p1659_p10) }
 0x3d1   : > { %2030 = vmatprep.subr.bf16.mxu0 %v2162_v26  ;;  %2011 = vmatpush3.bf16.msra.mxu1 %v2010_v36  ;;  %v2031_v59 = vpack.c.bf16 %v1142_v57, %v1141_v56  ;;  %v1144_v60 = vld [vmem:[%s2638_s5 + $0x18] sm:$0xff]  ;;  %v1660_v62 = vld [vmem:[%s2635_s2] ss:$0 sm:$0xff]  ;;  %v1662_v2 = vld [vmem:[#allocation8] ss:$0 sm:$0xff] }
 0x3d2   : > { %2012 = vmatprep.subr.bf16.mxu1 %v2162_v26  ;;  %v2034_v61 = vpack.c.bf16 %v1144_v60, %v1143_v58  ;;  %v1663_v4 = vld [vmem:[#allocation9] ss:$0 sm:$0xff]  ;;  %v1146_v8 = vld [vmem:[%s2638_s5 + $0x28] sm:$0xff]  ;;  %v1147_v10 = vld [vmem:[%s2638_s5 + $0x30] sm:$0xff] }
 0x3d3   : > { %1843 = vmatmul.mubr.msk.f32.vlgmr.msra.gmra.mrb[0].mxu0 %vm940_vm12, %v928_v39  ;;  %v1145_v7 = vld [vmem:[%s2638_s5 + $0x20] sm:$0xff]  ;;  %v1148_v11 = vld [vmem:[%s2638_s5 + $0x38] sm:$0xff]  ;;  %v1665_v17 = vld [vmem:[#allocation10] ss:$0 sm:$0xff] }
 0x3d4   : > { %1896 = vmatprep.mubr.msk.f32.mxu0 %vm2163_vm11, %v2164_v29  ;;  %2032 = vmatpush3.bf16.msra.mxu0 %v2031_v59  ;;  %v2037_v9 = vpack.c.bf16 %v1146_v8, %v1145_v7  ;;  %v2040_v12 = vpack.c.bf16 %v1148_v11, %v1147_v10  ;;  %v1664_v13 = vld [vmem:[%s2637_s4] ss:$0 sm:$0xff]  ;;  %v1666_v19 = vld [vmem:[#allocation11] ss:$0 sm:$0xff]  ;;  %v1231_v39 = vld [vmem:[#allocation6] sm:$0x1] }
 0x3d5   : > { %2014 = vmatpush3.bf16.msra.mxu1 %v2013_v40  ;;  %2033 = vmatprep.subr.bf16.mxu0 %v2162_v26  ;;  %v1667_v22 = vld [vmem:[%s2639_s6] ss:$0 sm:$0xff]  ;;  %v1242_v42 = vld [vmem:[#allocation7] sm:$0x1] }
 0x3d6   : > { %2015 = vmatprep.subr.bf16.mxu1 %v2162_v26 }
 0x3d8   : > { %2035 = vmatpush3.bf16.msra.mxu0 %v2034_v61 }
 0x3d9   : > { %2017 = vmatpush3.bf16.msra.mxu1 %v2016_v43  ;;  %2036 = vmatprep.subr.bf16.mxu0 %v2162_v26 }
 0x3da   : > { %2018 = vmatprep.subr.bf16.mxu1 %v2162_v26 }
 0x3dc   : > { %2038 = vmatpush3.bf16.msra.mxu0 %v2037_v9 }
 0x3dd   : > { %2020 = vmatpush3.bf16.msra.mxu1 %v2019_v46  ;;  %2039 = vmatprep.subr.bf16.mxu0 %v2162_v26 }
 0x3de   : > { %2021 = vmatprep.subr.bf16.mxu1 %v2162_v26 }
 0x3e0   : > { %2041 = vmatpush3.bf16.msra.mxu0 %v2040_v12 }
 0x3e1   : > { %2023 = vmatpush3.bf16.msra.mxu1 %v2022_v49 }
 0x3e2   : > { %2024 = vmatprep.subr.bf16.mxu1 %v2162_v26 }
 0x3e5   : > { %2026 = vmatpush3.bf16.msra.mxu1 %v2025_v52 }
 0x3e6   : > { %2027 = vmatprep.subr.bf16.mxu1 %v2162_v26 }
 0x3e9   : > { %2029 = vmatpush3.bf16.msra.mxu1 %v2028_v55 }
 0x4a6   : > { %v1010_v63 = vpop.f32.mrb[0].mxu0 }
 0x4a7   : > { %v1011_v0 = vadd.f32 %v1660_v62, %v1010_v63  ;;  %v1844_v1 = vpop.f32.mrb[1].mxu0 }
 0x4a9   : > { %v1014_v3 = vmax.f32 %v1011_v0, 0.0 }
 0x4ab   : > { %v1022_v5 = vmul.f32 %v1662_v2, %v1014_v3 }
 0x4ad   : > { %v1030_v6 = vadd.f32 %v1663_v4, %v1022_v5 }
 0x4af   : > { %1878 = vmatmul.mubr.f32.vlgmr.msra.gmra.mrb[0].mxu1 %v1030_v6 }
 0x582   : > { %v1120_v14 = vpop.f32.mrb[0].mxu1 }
 0x583   : > { %v1121_v15 = vadd.f32 %v1664_v13, %v1120_v14  ;;  %v1879_v16 = vpop.f32.mrb[1].mxu1 }
 0x585   : > { %v1124_v18 = vmax.f32 %v1121_v15, 0.0 }
 0x587   : > { %v1132_v20 = vmul.f32 %v1665_v17, %v1124_v18 }
 0x589   : > { %v1140_v21 = vadd.f32 %v1666_v19, %v1132_v20 }
 0x58b   : > { %1897 = vmatmul.mubr.msk.f32.vlgmr.msra.gmra.mrb[2].mxu0 %vm1156_vm13, %v1140_v21 }
 0x65e   : > { %v1226_v23 = vpop.f32.mrb[2].mxu0 }
 0x65f   : > { %v1227_v24 = vadd.f32 %v1667_v22, %v1226_v23  ;;  %v1898_v25 = vpop.f32.mrb[3].mxu0 }
 0x661   : > { %v1230_v26 = vmax.f32 %v1227_v24, 0.0 }
 0x663   : > { %v1232_v27 = vsel %vm940_vm12, %v1230_v26, 0.0  ;;  %v1243_v28 = vmul.f32 %v1230_v26, %v1230_v26 }
 0x664   : > { %v1233_v29 = vrot.slane %v1232_v27, 4 }
 0x665   : > { %v1244_v30 = vsel %vm940_vm12, %v1243_v28, 0.0 }
 0x666   : > { %v1234_v31 = vadd.f32 %v1233_v29, %v1232_v27  ;;  %v1245_v32 = vrot.slane %v1244_v30, 4 }
 0x668   : > { %v1235_v33 = vrot.slane %v1234_v31, 2  ;;  %v1246_v34 = vadd.f32 %v1245_v32, %v1244_v30 }
 0x66a   : > { %v1236_v35 = vadd.f32 %v1235_v33, %v1234_v31  ;;  %v1247_v36 = vrot.slane %v1246_v34, 2 }
 0x66c   : > { %v1237_v37 = vrot.slane %v1236_v35, 1  ;;  %v1248_v38 = vadd.f32 %v1247_v36, %v1246_v34 }
 0x66e   : > { %v1238_v40 = vadd.f32 %v1237_v37, %v1236_v35  ;;  %v1249_v41 = vrot.slane %v1248_v38, 1 }
 0x670   : > { %v1239_v43 = vadd.f32 %v1238_v40, %v1231_v39  ;;  %v1250_v44 = vadd.f32 %v1249_v41, %v1248_v38 }
 0x672   : > { %1241 = vst.msk [vmem:[#allocation6] sm:$0x1] %vm1240_vm14, %v1239_v43  ;;  %v1251_v45 = vadd.f32 %v1250_v44, %v1242_v42 }
 0x674   : > { %1252 = vst.msk [vmem:[#allocation7] sm:$0x1] %vm1240_vm14, %v1251_v45 }
 0x675 PF: > { %p1669_p11 = scmp.ne.s32.totalorder %s2143_s20, 3 }
 0x676   : > { %v1257_v46 = vld [vmem:[%s2634_s1] sm:$0xff] (!%p1669_p11)  ;;  %v1258_v47 = vld [vmem:[%s2634_s1 + $0x8] sm:$0xff] (!%p1669_p11)  ;;  %v1259_v48 = vld [vmem:[%s2634_s1 + $0x10] sm:$0xff] (!%p1669_p11)  ;;  %v2165_v49 = vmov (!%p1669_p11), 0.0|0.0   ;;  %vm2166_vm15 = vmmov (!%p1669_p11), 0   ;;  %v2167_v52 = vmov (!%p1669_p11), 0.0  }
 0x677   : > { %1255 = sbr.rel (%p1669_p11) target bundleno = 2468 (0x9a4), region = 112  ;;  %2042 = vmatprep.subr.bf16.mxu0 (!%p1669_p11), %v2165_v49  ;;  %v2043_v50 = vpack.c.bf16 (!%p1669_p11), %v1258_v47, %v1257_v46  ;;  %v1260_v51 = vld [vmem:[%s2634_s1 + $0x18] sm:$0xff] (!%p1669_p11)  ;;  %1907 = vmatprep.mubr.msk.f32.mxu0 (!%p1669_p11), %vm2166_vm15, %v2167_v52  ;;  %v1359_v53 = vld [vmem:[%s2636_s3] sm:$0xff] (!%p1669_p11)  ;;  %v1360_v54 = vld [vmem:[%s2636_s3 + $0x8] sm:$0xff] (!%p1669_p11)  ;;  %vm1268_vm0 = vcmask (!%p1669_p11), 261120   ;;  %vm1484_vm1 = vcmask (!%p1669_p11), 523264  }
 0x678   : > { %2048 = vmatprep.subr.bf16.mxu1 (!%p1669_p11), %v2165_v49  ;;  %v1361_v55 = vld [vmem:[%s2636_s3 + $0x10] sm:$0xff] (!%p1669_p11)  ;;  %v1362_v56 = vld [vmem:[%s2636_s3 + $0x18] sm:$0xff] (!%p1669_p11)  ;;  %1942 = vmatprep.mubr.msk.f32.mxu1 (!%p1669_p11), %vm2166_vm15, %v2167_v52  ;;  %v2046_v57 = vpack.c.bf16 (!%p1669_p11), %v1260_v51, %v1259_v48  ;;  %v2049_v58 = vpack.c.bf16 (!%p1669_p11), %v1360_v54, %v1359_v53  ;;  %v1363_v60 = vld [vmem:[%s2636_s3 + $0x20] sm:$0xff] (!%p1669_p11)  ;;  %vm1578_vm2 = vcmask (!%p1669_p11), 7168  }
 0x679   : > { %2044 = vmatpush3.bf16.msra.mxu0 (!%p1669_p11), %v2043_v50  ;;  %v2052_v59 = vpack.c.bf16 (!%p1669_p11), %v1362_v56, %v1361_v55  ;;  %v1364_v61 = vld [vmem:[%s2636_s3 + $0x28] sm:$0xff] (!%p1669_p11)  ;;  %v1256_v62 = vld [vmem:[%s2633_s0] sm:$0xff] (!%p1669_p11)  ;;  %v1365_v0 = vld [vmem:[%s2636_s3 + $0x30] sm:$0xff] (!%p1669_p11) }
 0x67a   : > { %2045 = vmatprep.subr.bf16.mxu0 (!%p1669_p11), %v2165_v49  ;;  %2050 = vmatpush3.bf16.msra.mxu1 (!%p1669_p11), %v2049_v58  ;;  %v2055_v63 = vpack.c.bf16 (!%p1669_p11), %v1364_v61, %v1363_v60  ;;  %v1366_v1 = vld [vmem:[%s2636_s3 + $0x38] sm:$0xff] (!%p1669_p11)  ;;  %v1367_v3 = vld [vmem:[%s2636_s3 + $0x40] sm:$0xff] (!%p1669_p11)  ;;  %v1368_v4 = vld [vmem:[%s2636_s3 + $0x48] sm:$0xff] (!%p1669_p11) }
 0x67b   : > { %2051 = vmatprep.subr.bf16.mxu1 (!%p1669_p11), %v2165_v49  ;;  %v2058_v2 = vpack.c.bf16 (!%p1669_p11), %v1366_v1, %v1365_v0  ;;  %v2061_v5 = vpack.c.bf16 (!%p1669_p11), %v1368_v4, %v1367_v3  ;;  %v1369_v6 = vld [vmem:[%s2636_s3 + $0x50] sm:$0xff] (!%p1669_p11)  ;;  %v1370_v7 = vld [vmem:[%s2636_s3 + $0x58] sm:$0xff] (!%p1669_p11)  ;;  %v1371_v9 = vld [vmem:[%s2636_s3 + $0x60] sm:$0xff] (!%p1669_p11) }
 0x67c   : > { %v2064_v8 = vpack.c.bf16 (!%p1669_p11), %v1370_v7, %v1369_v6  ;;  %v1372_v10 = vld [vmem:[%s2636_s3 + $0x68] sm:$0xff] (!%p1669_p11)  ;;  %v1373_v12 = vld [vmem:[%s2636_s3 + $0x70] sm:$0xff] (!%p1669_p11)  ;;  %v1374_v13 = vld [vmem:[%s2636_s3 + $0x78] sm:$0xff] (!%p1669_p11) }
 0x67d   : > { %2047 = vmatpush3.bf16.msra.mxu0 (!%p1669_p11), %v2046_v57  ;;  %v2067_v11 = vpack.c.bf16 (!%p1669_p11), %v1372_v10, %v1371_v9  ;;  %v2070_v14 = vpack.c.bf16 (!%p1669_p11), %v1374_v13, %v1373_v12  ;;  %v1469_v15 = vld [vmem:[%s2638_s5] sm:$0xff] (!%p1669_p11)  ;;  %v1470_v16 = vld [vmem:[%s2638_s5 + $0x8] sm:$0xff] (!%p1669_p11)  ;;  %v1471_v17 = vld [vmem:[%s2638_s5 + $0x10] sm:$0xff] (!%p1669_p11) }
 0x67e   : > { %2072 = vmatprep.subr.bf16.mxu0 %v2165_v49  ;;  %2053 = vmatpush3.bf16.msra.mxu1 %v2052_v59  ;;  %v2073_v18 = vpack.c.bf16 %v1470_v16, %v1469_v15  ;;  %v1472_v19 = vld [vmem:[%s2638_s5 + $0x18] sm:$0xff]  ;;  %v1670_v21 = vld [vmem:[%s2635_s2] ss:$0 sm:$0xff]  ;;  %v1672_v25 = vld [vmem:[#allocation8] ss:$0 sm:$0xff] }
 0x67f   : > { %2054 = vmatprep.subr.bf16.mxu1 %v2165_v49  ;;  %v2076_v20 = vpack.c.bf16 %v1472_v19, %v1471_v17  ;;  %v1673_v27 = vld [vmem:[#allocation9] ss:$0 sm:$0xff]  ;;  %v1474_v31 = vld [vmem:[%s2638_s5 + $0x28] sm:$0xff]  ;;  %v1475_v33 = vld [vmem:[%s2638_s5 + $0x30] sm:$0xff] }
 0x680   : > { %1908 = vmatmul.mubr.msk.f32.vlgmr.msra.gmra.mrb[0].mxu0 %vm1268_vm0, %v1256_v62  ;;  %v1473_v30 = vld [vmem:[%s2638_s5 + $0x20] sm:$0xff]  ;;  %v1476_v34 = vld [vmem:[%s2638_s5 + $0x38] sm:$0xff]  ;;  %v1675_v40 = vld [vmem:[#allocation10] ss:$0 sm:$0xff] }
 0x681   : > { %1961 = vmatprep.mubr.msk.f32.mxu0 %vm2166_vm15, %v2167_v52  ;;  %2074 = vmatpush3.bf16.msra.mxu0 %v2073_v18  ;;  %v2079_v32 = vpack.c.bf16 %v1474_v31, %v1473_v30  ;;  %v2082_v35 = vpack.c.bf16 %v1476_v34, %v1475_v33  ;;  %v1674_v36 = vld [vmem:[%s2637_s4] ss:$0 sm:$0xff]  ;;  %v1676_v42 = vld [vmem:[#allocation11] ss:$0 sm:$0xff]  ;;  %v1680_v53 = vld [vmem:[#allocation13] ss:$0 sm:$0xff] }
 0x682   : > { %2056 = vmatpush3.bf16.msra.mxu1 %v2055_v63  ;;  %2075 = vmatprep.subr.bf16.mxu0 %v2165_v49  ;;  %v1677_v45 = vld [vmem:[%s2639_s6] ss:$0 sm:$0xff] }
 0x683   : > { %2057 = vmatprep.subr.bf16.mxu1 %v2165_v49 }
 0x685   : > { %2077 = vmatpush3.bf16.msra.mxu0 %v2076_v20 }
 0x686   : > { %2059 = vmatpush3.bf16.msra.mxu1 %v2058_v2  ;;  %2078 = vmatprep.subr.bf16.mxu0 %v2165_v49 }
 0x687   : > { %2060 = vmatprep.subr.bf16.mxu1 %v2165_v49 }
 0x689   : > { %2080 = vmatpush3.bf16.msra.mxu0 %v2079_v32 }
 0x68a   : > { %2062 = vmatpush3.bf16.msra.mxu1 %v2061_v5  ;;  %2081 = vmatprep.subr.bf16.mxu0 %v2165_v49 }
 0x68b   : > { %2063 = vmatprep.subr.bf16.mxu1 %v2165_v49 }
 0x68d   : > { %2083 = vmatpush3.bf16.msra.mxu0 %v2082_v35 }
 0x68e   : > { %2065 = vmatpush3.bf16.msra.mxu1 %v2064_v8 }
 0x68f   : > { %2066 = vmatprep.subr.bf16.mxu1 %v2165_v49 }
 0x692   : > { %2068 = vmatpush3.bf16.msra.mxu1 %v2067_v11 }
 0x693   : > { %2069 = vmatprep.subr.bf16.mxu1 %v2165_v49  ;;  %v1679_v49 = vld [vmem:[#allocation12] ss:$0 sm:$0xff] }
 0x696   : > { %2071 = vmatpush3.bf16.msra.mxu1 %v2070_v14 }
 0x753   : > { %v1338_v22 = vpop.f32.mrb[0].mxu0 }
 0x754   : > { %v1339_v23 = vadd.f32 %v1670_v21, %v1338_v22  ;;  %v1909_v24 = vpop.f32.mrb[1].mxu0 }
 0x756   : > { %v1342_v26 = vmax.f32 %v1339_v23, 0.0 }
 0x758   : > { %v1350_v28 = vmul.f32 %v1672_v25, %v1342_v26 }
 0x75a   : > { %v1358_v29 = vadd.f32 %v1673_v27, %v1350_v28 }
 0x75c   : > { %1943 = vmatmul.mubr.f32.vlgmr.msra.gmra.mrb[0].mxu1 %v1358_v29 }
 0x82f   : > { %v1448_v37 = vpop.f32.mrb[0].mxu1 }
 0x830   : > { %v1449_v38 = vadd.f32 %v1674_v36, %v1448_v37  ;;  %v1944_v39 = vpop.f32.mrb[1].mxu1 }
 0x832   : > { %v1452_v41 = vmax.f32 %v1449_v38, 0.0 }
 0x834   : > { %v1460_v43 = vmul.f32 %v1675_v40, %v1452_v41 }
 0x836   : > { %v1468_v44 = vadd.f32 %v1676_v42, %v1460_v43 }
 0x838   : > { %1962 = vmatmul.mubr.msk.f32.vlgmr.msra.gmra.mrb[2].mxu0 %vm1484_vm1, %v1468_v44 }
 0x90b   : > { %v1554_v46 = vpop.f32.mrb[2].mxu0 }
 0x90c   : > { %v1555_v47 = vadd.f32 %v1677_v45, %v1554_v46  ;;  %v1963_v48 = vpop.f32.mrb[3].mxu0 }
 0x90e   : > { %v1558_v50 = vmax.f32 %v1555_v47, 0.0 }
 0x910   : > { %v1566_v51 = vmul.f32 %v1679_v49, %v1558_v50 }
 0x912   : > { %v1567_v52 = vsel %vm1268_vm0, %v1566_v51, 0.0 }
 0x913   : > { %1568 = vadd.xlane.f32.xlu0 %v1567_v52 }
 0x9a0   : > { %v1569_v54 = vpop.xlane.xlu0 %1568 }
 0x9a1   : > { %v1577_v55 = vadd.f32 %v1680_v53, %v1569_v54 }
 0x9a3   : > { %1579 = vst.msk [vmem:[%s2648_s15] sm:$0xff] %vm1578_vm2, %v1577_v55 }
 0x9a4 PF: > { %s27_s22 = sadd.s32 1, %s2151_s22   ;;  %s2649_s20 = smov %s2147_s21 }
 0x9a5   : > { %p24_p12 = scmp.ge.s32.totalorder %s27_s22, 6   ;;  %s2650_s21 = smov %s2652_s8 }
 0x9a7   :  { %26 = sbr.rel (!%p24_p12) target bundleno = 3 (0x3), region = 142 }

</bundles_post_ra>
